<compile_context>
chip_gen: v7x
topology: tpu7x:2x2x1
jax: 0.10.0
libtpu: 0.0.40
codegen_flags: <defaults>
</compile_context>

<pallas_src>
import functools

import jax
import jax.numpy as jnp
from jax.experimental import pallas as pl
from jax.experimental.pallas import tpu as pltpu

KSIZE = 7
PAD = KSIZE // 2
LANE = 128        # TPU lane width; W is padded up to a multiple of this
CHUNK_C = 8       # channels folded per dense (chunk, H, Wp) load


def spatial_attention_kernel(x_ref, w_ref, o_ref, *, H, W, NF):
    """SpatialAttention forward for NF images per grid step.

    x_ref: (NF, C, H, Wp)    VMEM  activations (W zero-padded to Wp on lanes)
    w_ref: (2*KSIZE*KSIZE,)  SMEM  conv taps [avg-channel taps | max-channel taps]
    o_ref: (NF, 1, H, Wp)    VMEM  sigmoid(conv7x7([mean_c(x); max_c(x)]))
    """
    C = x_ref.shape[1]
    Wp = x_ref.shape[3]

    col = jax.lax.broadcasted_iota(jnp.int32, (H, Wp), 1)   # lane index
    row = jax.lax.broadcasted_iota(jnp.int32, (H, Wp), 0)   # sublane index

    for n in range(NF):
        # ---- fused channel mean + max, chunked sublane-dense loads ---------
        x0 = x_ref[n, 0:min(C, CHUNK_C)].astype(jnp.float32)     # (c, H, Wp)
        csum = jnp.sum(x0, axis=0)
        cmax = jnp.max(x0, axis=0)
        for c0 in range(CHUNK_C, C, CHUNK_C):
            xc = x_ref[n, c0:min(C, c0 + CHUNK_C)].astype(jnp.float32)
            csum = csum + jnp.sum(xc, axis=0)
            cmax = jnp.maximum(cmax, jnp.max(xc, axis=0))
        avg = csum * (1.0 / C)

        # ---- stage 1: 7 column-shifted copies of each map (lane rolls) -----
        sa = []
        sm = []
        for dx in range(KSIZE):
            offx = dx - PAD                    # source col = out col + offx
            if offx == 0:
                sa.append(avg)
                sm.append(cmax)
                continue
            shift = (-offx) % Wp
            a_sh = pltpu.roll(avg, shift, 1)
            m_sh = pltpu.roll(cmax, shift, 1)
            # One-sided source-validity mask: the other bound holds for every
            # valid output column; padded output columns are discarded anyway.
            ok = (col >= -offx) if offx < 0 else (col <= (W - 1) - offx)
            sa.append(jnp.where(ok, a_sh, 0.0))
            sm.append(jnp.where(ok, m_sh, 0.0))

        # ---- stage 2: per-dy VALU combine, then ONE sublane roll + mask ----
        acc = jnp.zeros((H, Wp), jnp.float32)
        for dy in range(KSIZE):
            offy = dy - PAD                    # source row = out row + offy
            r = (w_ref[dy * KSIZE] * sa[0]
                 + w_ref[KSIZE * KSIZE + dy * KSIZE] * sm[0])
            for dx in range(1, KSIZE):
                w_a = w_ref[dy * KSIZE + dx]                    # avg-channel tap
                w_m = w_ref[KSIZE * KSIZE + dy * KSIZE + dx]    # max-channel tap
                r = r + (w_a * sa[dx] + w_m * sm[dx])
            if offy == 0:
                acc = acc + r
            else:
                r_sh = pltpu.roll(r, (-offy) % H, 0)
                ok = (row >= -offy) if offy < 0 else (row <= (H - 1) - offy)
                acc = acc + jnp.where(ok, r_sh, 0.0)

        o_ref[n, 0] = jax.nn.sigmoid(acc).astype(o_ref.dtype)


def _pick_batch_fold(N, per_image_bytes, vmem_budget_bytes=8 << 20):
    """Largest divisor of N that keeps >=2 grid steps (when N >= 2, so both
    v7x TensorCores get work) and keeps the double-buffered input block inside
    a conservative VMEM budget."""
    best = 1
    for nf in range(1, N + 1):
        if N % nf:
            continue
        if N >= 2 and N // nf < 2:
            continue
        if 2 * nf * per_image_bytes > vmem_budget_bytes:
            continue
        best = nf
    return best


def spatial_attention(x, conv_weight):
    """x: (N, C, H, W); conv_weight: (1, 2, KSIZE, KSIZE) (OIHW, no bias)."""
    N, C, H, W = x.shape
    Wp = ((W + LANE - 1) // LANE) * LANE
    x_p = x if Wp == W else jnp.pad(x, ((0, 0), (0, 0), (0, 0), (0, Wp - W)))
    w_flat = conv_weight.reshape(2 * KSIZE * KSIZE).astype(jnp.float32)

    per_image_bytes = C * H * Wp * x.dtype.itemsize
    NF = _pick_batch_fold(N, per_image_bytes)

    kernel = functools.partial(spatial_attention_kernel, H=H, W=W, NF=NF)

    out = pl.pallas_call(
        kernel,
        out_shape=jax.ShapeDtypeStruct((N, 1, H, Wp), x.dtype),
        grid_spec=pltpu.PrefetchScalarGridSpec(
            num_scalar_prefetch=0,
            grid=(N // NF,),
            in_specs=[
                pl.BlockSpec((NF, C, H, Wp), lambda n: (n, 0, 0, 0)),
                pl.BlockSpec((2 * KSIZE * KSIZE,), lambda n: (0,),
                             memory_space=pltpu.MemorySpace.SMEM),
            ],
            out_specs=pl.BlockSpec((NF, 1, H, Wp), lambda n: (n, 0, 0, 0)),
        ),
        compiler_params=pltpu.CompilerParams(
            dimension_semantics=("parallel",)),
    )(x_p, w_flat)

    return out[:, :, :, :W]


def spatial_attention_reference(x, conv_weight):
    avg = jnp.mean(x, axis=1, keepdims=True)
    mx = jnp.max(x, axis=1, keepdims=True)
    cat = jnp.concatenate([avg, mx], axis=1)
    y = jax.lax.conv_general_dilated(
        cat, conv_weight,
        window_strides=(1, 1),
        padding=[(PAD, PAD), (PAD, PAD)],
        dimension_numbers=("NCHW", "OIHW", "NCHW"))
    return jax.nn.sigmoid(y)


if __name__ == "__main__":
    key = jax.random.PRNGKey(0)
    kx, kw = jax.random.split(key)

    N, C, H, W = 2, 4, 16, 16
    x = jax.random.normal(kx, (N, C, H, W), dtype=jnp.float32)

    # Deterministic synthetic conv weight (Conv2d(2, 1, 7, bias=False) shape).
    bound = 1.0 / jnp.sqrt(2.0 * KSIZE * KSIZE)
    conv_weight = jax.random.uniform(
        kw, (1, 2, KSIZE, KSIZE), minval=-bound, maxval=bound,
        dtype=jnp.float32)

    out = spatial_attention(x, conv_weight)
    out = jax.block_until_ready(out)

    ref = spatial_attention_reference(x, conv_weight)
    assert out.shape == (N, 1, H, W)
    assert jnp.allclose(out, ref, atol=1e-5, rtol=1e-5)

    print("KERNEL_OK")
</pallas_src>

<mosaic_0001>
module attributes {stable_mosaic.version = 11 : i64} {
  func.func @spatial_attention_kernel(%arg0: i32, %arg1: memref<1x4x16x128xf32, #tpu.memory_space<vmem>>, %arg2: memref<98xf32, #tpu.memory_space<smem>>, %arg3: memref<1x1x16x128xf32, #tpu.memory_space<vmem>>) attributes {dimension_semantics = [#tpu.dimension_semantics<parallel>], iteration_bounds = array<i64: 2>, scalar_prefetch = 0 : i64, scratch_operands = 0 : i64, tpu.core_type = #tpu.core_type<tc>, window_params = [{transform_indices = @transform_0, window_bounds = array<i64: 1, 4, 16, 128>}, {transform_indices = @transform_1, window_bounds = array<i64: 98>}, {transform_indices = @transform_2, window_bounds = array<i64: 1, 1, 16, 128>}]} {
    %0 = tpu.iota {dimensions = array<i32: 1>} : vector<16x128xi32>
    %1 = tpu.iota {dimensions = array<i32: 0>} : vector<16x128xi32>
    %c0 = arith.constant 0 : index
    %c0_0 = arith.constant 0 : index
    %c0_1 = arith.constant 0 : index
    %c0_2 = arith.constant 0 : index
    %2 = vector.load %arg1[%c0, %c0_0, %c0_1, %c0_2] : memref<1x4x16x128xf32, #tpu.memory_space<vmem>>, vector<1x4x16x128xf32>
    %3 = vector.shape_cast %2 : vector<1x4x16x128xf32> to vector<4x16x128xf32>
    %cst = arith.constant dense<0.000000e+00> : vector<16x128xf32>
    %4 = vector.multi_reduction <add>, %3, %cst [0] : vector<4x16x128xf32> to vector<16x128xf32>
    %cst_3 = arith.constant dense<0xFF800000> : vector<16x128xf32>
    %5 = vector.multi_reduction <maximumf>, %3, %cst_3 [0] : vector<4x16x128xf32> to vector<16x128xf32>
    %cst_4 = arith.constant 2.500000e-01 : f32
    %6 = vector.broadcast %cst_4 : f32 to vector<16x128xf32>
    %7 = arith.mulf %4, %6 : vector<16x128xf32>
    %c3_i32 = arith.constant 3 : i32
    %8 = tpu.dynamic_rotate %7 by %c3_i32 dim 1 : vector<16x128xf32>, i32 -> vector<16x128xf32>
    %c3_i32_5 = arith.constant 3 : i32
    %9 = tpu.dynamic_rotate %5 by %c3_i32_5 dim 1 : vector<16x128xf32>, i32 -> vector<16x128xf32>
    %c3_i32_6 = arith.constant 3 : i32
    %10 = vector.broadcast %c3_i32_6 : i32 to vector<16x128xi32>
    %11 = arith.cmpi sge, %0, %10 : vector<16x128xi32>
    %cst_7 = arith.constant 0.000000e+00 : f32
    %12 = vector.broadcast %cst_7 : f32 to vector<16x128xf32>
    %13 = arith.select %11, %8, %12 : vector<16x128xi1>, vector<16x128xf32>
    %cst_8 = arith.constant 0.000000e+00 : f32
    %14 = vector.broadcast %cst_8 : f32 to vector<16x128xf32>
    %15 = arith.select %11, %9, %14 : vector<16x128xi1>, vector<16x128xf32>
    %c2_i32 = arith.constant 2 : i32
    %16 = tpu.dynamic_rotate %7 by %c2_i32 dim 1 : vector<16x128xf32>, i32 -> vector<16x128xf32>
    %c2_i32_9 = arith.constant 2 : i32
    %17 = tpu.dynamic_rotate %5 by %c2_i32_9 dim 1 : vector<16x128xf32>, i32 -> vector<16x128xf32>
    %c2_i32_10 = arith.constant 2 : i32
    %18 = vector.broadcast %c2_i32_10 : i32 to vector<16x128xi32>
    %19 = arith.cmpi sge, %0, %18 : vector<16x128xi32>
    %cst_11 = arith.constant 0.000000e+00 : f32
    %20 = vector.broadcast %cst_11 : f32 to vector<16x128xf32>
    %21 = arith.select %19, %16, %20 : vector<16x128xi1>, vector<16x128xf32>
    %cst_12 = arith.constant 0.000000e+00 : f32
    %22 = vector.broadcast %cst_12 : f32 to vector<16x128xf32>
    %23 = arith.select %19, %17, %22 : vector<16x128xi1>, vector<16x128xf32>
    %c1_i32 = arith.constant 1 : i32
    %24 = tpu.dynamic_rotate %7 by %c1_i32 dim 1 : vector<16x128xf32>, i32 -> vector<16x128xf32>
    %c1_i32_13 = arith.constant 1 : i32
    %25 = tpu.dynamic_rotate %5 by %c1_i32_13 dim 1 : vector<16x128xf32>, i32 -> vector<16x128xf32>
    %c1_i32_14 = arith.constant 1 : i32
    %26 = vector.broadcast %c1_i32_14 : i32 to vector<16x128xi32>
    %27 = arith.cmpi sge, %0, %26 : vector<16x128xi32>
    %cst_15 = arith.constant 0.000000e+00 : f32
    %28 = vector.broadcast %cst_15 : f32 to vector<16x128xf32>
    %29 = arith.select %27, %24, %28 : vector<16x128xi1>, vector<16x128xf32>
    %cst_16 = arith.constant 0.000000e+00 : f32
    %30 = vector.broadcast %cst_16 : f32 to vector<16x128xf32>
    %31 = arith.select %27, %25, %30 : vector<16x128xi1>, vector<16x128xf32>
    %c127_i32 = arith.constant 127 : i32
    %32 = tpu.dynamic_rotate %7 by %c127_i32 dim 1 : vector<16x128xf32>, i32 -> vector<16x128xf32>
    %c127_i32_17 = arith.constant 127 : i32
    %33 = tpu.dynamic_rotate %5 by %c127_i32_17 dim 1 : vector<16x128xf32>, i32 -> vector<16x128xf32>
    %c14_i32 = arith.constant 14 : i32
    %34 = vector.broadcast %c14_i32 : i32 to vector<16x128xi32>
    %35 = arith.cmpi sle, %0, %34 : vector<16x128xi32>
    %cst_18 = arith.constant 0.000000e+00 : f32
    %36 = vector.broadcast %cst_18 : f32 to vector<16x128xf32>
    %37 = arith.select %35, %32, %36 : vector<16x128xi1>, vector<16x128xf32>
    %cst_19 = arith.constant 0.000000e+00 : f32
    %38 = vector.broadcast %cst_19 : f32 to vector<16x128xf32>
    %39 = arith.select %35, %33, %38 : vector<16x128xi1>, vector<16x128xf32>
    %c126_i32 = arith.constant 126 : i32
    %40 = tpu.dynamic_rotate %7 by %c126_i32 dim 1 : vector<16x128xf32>, i32 -> vector<16x128xf32>
    %c126_i32_20 = arith.constant 126 : i32
    %41 = tpu.dynamic_rotate %5 by %c126_i32_20 dim 1 : vector<16x128xf32>, i32 -> vector<16x128xf32>
    %c13_i32 = arith.constant 13 : i32
    %42 = vector.broadcast %c13_i32 : i32 to vector<16x128xi32>
    %43 = arith.cmpi sle, %0, %42 : vector<16x128xi32>
    %cst_21 = arith.constant 0.000000e+00 : f32
    %44 = vector.broadcast %cst_21 : f32 to vector<16x128xf32>
    %45 = arith.select %43, %40, %44 : vector<16x128xi1>, vector<16x128xf32>
    %cst_22 = arith.constant 0.000000e+00 : f32
    %46 = vector.broadcast %cst_22 : f32 to vector<16x128xf32>
    %47 = arith.select %43, %41, %46 : vector<16x128xi1>, vector<16x128xf32>
    %c125_i32 = arith.constant 125 : i32
    %48 = tpu.dynamic_rotate %7 by %c125_i32 dim 1 : vector<16x128xf32>, i32 -> vector<16x128xf32>
    %c125_i32_23 = arith.constant 125 : i32
    %49 = tpu.dynamic_rotate %5 by %c125_i32_23 dim 1 : vector<16x128xf32>, i32 -> vector<16x128xf32>
    %c12_i32 = arith.constant 12 : i32
    %50 = vector.broadcast %c12_i32 : i32 to vector<16x128xi32>
    %51 = arith.cmpi sle, %0, %50 : vector<16x128xi32>
    %cst_24 = arith.constant 0.000000e+00 : f32
    %52 = vector.broadcast %cst_24 : f32 to vector<16x128xf32>
    %53 = arith.select %51, %48, %52 : vector<16x128xi1>, vector<16x128xf32>
    %cst_25 = arith.constant 0.000000e+00 : f32
    %54 = vector.broadcast %cst_25 : f32 to vector<16x128xf32>
    %55 = arith.select %51, %49, %54 : vector<16x128xi1>, vector<16x128xf32>
    %cst_26 = arith.constant 0.000000e+00 : f32
    %56 = vector.broadcast %cst_26 : f32 to vector<16x128xf32>
    %c0_27 = arith.constant 0 : index
    %57 = memref.load %arg2[%c0_27] : memref<98xf32, #tpu.memory_space<smem>>
    %58 = vector.broadcast %57 : f32 to vector<16x128xf32>
    %59 = arith.mulf %58, %13 : vector<16x128xf32>
    %c49 = arith.constant 49 : index
    %60 = memref.load %arg2[%c49] : memref<98xf32, #tpu.memory_space<smem>>
    %61 = vector.broadcast %60 : f32 to vector<16x128xf32>
    %62 = arith.mulf %61, %15 : vector<16x128xf32>
    %63 = arith.addf %59, %62 : vector<16x128xf32>
    %c1 = arith.constant 1 : index
    %64 = memref.load %arg2[%c1] : memref<98xf32, #tpu.memory_space<smem>>
    %c50 = arith.constant 50 : index
    %65 = memref.load %arg2[%c50] : memref<98xf32, #tpu.memory_space<smem>>
    %66 = vector.broadcast %64 : f32 to vector<16x128xf32>
    %67 = arith.mulf %66, %21 : vector<16x128xf32>
    %68 = vector.broadcast %65 : f32 to vector<16x128xf32>
    %69 = arith.mulf %68, %23 : vector<16x128xf32>
    %70 = arith.addf %67, %69 : vector<16x128xf32>
    %71 = arith.addf %63, %70 : vector<16x128xf32>
    %c2 = arith.constant 2 : index
    %72 = memref.load %arg2[%c2] : memref<98xf32, #tpu.memory_space<smem>>
    %c51 = arith.constant 51 : index
    %73 = memref.load %arg2[%c51] : memref<98xf32, #tpu.memory_space<smem>>
    %74 = vector.broadcast %72 : f32 to vector<16x128xf32>
    %75 = arith.mulf %74, %29 : vector<16x128xf32>
    %76 = vector.broadcast %73 : f32 to vector<16x128xf32>
    %77 = arith.mulf %76, %31 : vector<16x128xf32>
    %78 = arith.addf %75, %77 : vector<16x128xf32>
    %79 = arith.addf %71, %78 : vector<16x128xf32>
    %c3 = arith.constant 3 : index
    %80 = memref.load %arg2[%c3] : memref<98xf32, #tpu.memory_space<smem>>
    %c52 = arith.constant 52 : index
    %81 = memref.load %arg2[%c52] : memref<98xf32, #tpu.memory_space<smem>>
    %82 = vector.broadcast %80 : f32 to vector<16x128xf32>
    %83 = arith.mulf %82, %7 : vector<16x128xf32>
    %84 = vector.broadcast %81 : f32 to vector<16x128xf32>
    %85 = arith.mulf %84, %5 : vector<16x128xf32>
    %86 = arith.addf %83, %85 : vector<16x128xf32>
    %87 = arith.addf %79, %86 : vector<16x128xf32>
    %c4 = arith.constant 4 : index
    %88 = memref.load %arg2[%c4] : memref<98xf32, #tpu.memory_space<smem>>
    %c53 = arith.constant 53 : index
    %89 = memref.load %arg2[%c53] : memref<98xf32, #tpu.memory_space<smem>>
    %90 = vector.broadcast %88 : f32 to vector<16x128xf32>
    %91 = arith.mulf %90, %37 : vector<16x128xf32>
    %92 = vector.broadcast %89 : f32 to vector<16x128xf32>
    %93 = arith.mulf %92, %39 : vector<16x128xf32>
    %94 = arith.addf %91, %93 : vector<16x128xf32>
    %95 = arith.addf %87, %94 : vector<16x128xf32>
    %c5 = arith.constant 5 : index
    %96 = memref.load %arg2[%c5] : memref<98xf32, #tpu.memory_space<smem>>
    %c54 = arith.constant 54 : index
    %97 = memref.load %arg2[%c54] : memref<98xf32, #tpu.memory_space<smem>>
    %98 = vector.broadcast %96 : f32 to vector<16x128xf32>
    %99 = arith.mulf %98, %45 : vector<16x128xf32>
    %100 = vector.broadcast %97 : f32 to vector<16x128xf32>
    %101 = arith.mulf %100, %47 : vector<16x128xf32>
    %102 = arith.addf %99, %101 : vector<16x128xf32>
    %103 = arith.addf %95, %102 : vector<16x128xf32>
    %c6 = arith.constant 6 : index
    %104 = memref.load %arg2[%c6] : memref<98xf32, #tpu.memory_space<smem>>
    %c55 = arith.constant 55 : index
    %105 = memref.load %arg2[%c55] : memref<98xf32, #tpu.memory_space<smem>>
    %106 = vector.broadcast %104 : f32 to vector<16x128xf32>
    %107 = arith.mulf %106, %53 : vector<16x128xf32>
    %108 = vector.broadcast %105 : f32 to vector<16x128xf32>
    %109 = arith.mulf %108, %55 : vector<16x128xf32>
    %110 = arith.addf %107, %109 : vector<16x128xf32>
    %111 = arith.addf %103, %110 : vector<16x128xf32>
    %c3_i32_28 = arith.constant 3 : i32
    %112 = tpu.dynamic_rotate %111 by %c3_i32_28 dim 0 : vector<16x128xf32>, i32 -> vector<16x128xf32>
    %c3_i32_29 = arith.constant 3 : i32
    %113 = vector.broadcast %c3_i32_29 : i32 to vector<16x128xi32>
    %114 = arith.cmpi sge, %1, %113 : vector<16x128xi32>
    %cst_30 = arith.constant 0.000000e+00 : f32
    %115 = vector.broadcast %cst_30 : f32 to vector<16x128xf32>
    %116 = arith.select %114, %112, %115 : vector<16x128xi1>, vector<16x128xf32>
    %117 = arith.addf %56, %116 : vector<16x128xf32>
    %c7 = arith.constant 7 : index
    %118 = memref.load %arg2[%c7] : memref<98xf32, #tpu.memory_space<smem>>
    %119 = vector.broadcast %118 : f32 to vector<16x128xf32>
    %120 = arith.mulf %119, %13 : vector<16x128xf32>
    %c56 = arith.constant 56 : index
    %121 = memref.load %arg2[%c56] : memref<98xf32, #tpu.memory_space<smem>>
    %122 = vector.broadcast %121 : f32 to vector<16x128xf32>
    %123 = arith.mulf %122, %15 : vector<16x128xf32>
    %124 = arith.addf %120, %123 : vector<16x128xf32>
    %c8 = arith.constant 8 : index
    %125 = memref.load %arg2[%c8] : memref<98xf32, #tpu.memory_space<smem>>
    %c57 = arith.constant 57 : index
    %126 = memref.load %arg2[%c57] : memref<98xf32, #tpu.memory_space<smem>>
    %127 = vector.broadcast %125 : f32 to vector<16x128xf32>
    %128 = arith.mulf %127, %21 : vector<16x128xf32>
    %129 = vector.broadcast %126 : f32 to vector<16x128xf32>
    %130 = arith.mulf %129, %23 : vector<16x128xf32>
    %131 = arith.addf %128, %130 : vector<16x128xf32>
    %132 = arith.addf %124, %131 : vector<16x128xf32>
    %c9 = arith.constant 9 : index
    %133 = memref.load %arg2[%c9] : memref<98xf32, #tpu.memory_space<smem>>
    %c58 = arith.constant 58 : index
    %134 = memref.load %arg2[%c58] : memref<98xf32, #tpu.memory_space<smem>>
    %135 = vector.broadcast %133 : f32 to vector<16x128xf32>
    %136 = arith.mulf %135, %29 : vector<16x128xf32>
    %137 = vector.broadcast %134 : f32 to vector<16x128xf32>
    %138 = arith.mulf %137, %31 : vector<16x128xf32>
    %139 = arith.addf %136, %138 : vector<16x128xf32>
    %140 = arith.addf %132, %139 : vector<16x128xf32>
    %c10 = arith.constant 10 : index
    %141 = memref.load %arg2[%c10] : memref<98xf32, #tpu.memory_space<smem>>
    %c59 = arith.constant 59 : index
    %142 = memref.load %arg2[%c59] : memref<98xf32, #tpu.memory_space<smem>>
    %143 = vector.broadcast %141 : f32 to vector<16x128xf32>
    %144 = arith.mulf %143, %7 : vector<16x128xf32>
    %145 = vector.broadcast %142 : f32 to vector<16x128xf32>
    %146 = arith.mulf %145, %5 : vector<16x128xf32>
    %147 = arith.addf %144, %146 : vector<16x128xf32>
    %148 = arith.addf %140, %147 : vector<16x128xf32>
    %c11 = arith.constant 11 : index
    %149 = memref.load %arg2[%c11] : memref<98xf32, #tpu.memory_space<smem>>
    %c60 = arith.constant 60 : index
    %150 = memref.load %arg2[%c60] : memref<98xf32, #tpu.memory_space<smem>>
    %151 = vector.broadcast %149 : f32 to vector<16x128xf32>
    %152 = arith.mulf %151, %37 : vector<16x128xf32>
    %153 = vector.broadcast %150 : f32 to vector<16x128xf32>
    %154 = arith.mulf %153, %39 : vector<16x128xf32>
    %155 = arith.addf %152, %154 : vector<16x128xf32>
    %156 = arith.addf %148, %155 : vector<16x128xf32>
    %c12 = arith.constant 12 : index
    %157 = memref.load %arg2[%c12] : memref<98xf32, #tpu.memory_space<smem>>
    %c61 = arith.constant 61 : index
    %158 = memref.load %arg2[%c61] : memref<98xf32, #tpu.memory_space<smem>>
    %159 = vector.broadcast %157 : f32 to vector<16x128xf32>
    %160 = arith.mulf %159, %45 : vector<16x128xf32>
    %161 = vector.broadcast %158 : f32 to vector<16x128xf32>
    %162 = arith.mulf %161, %47 : vector<16x128xf32>
    %163 = arith.addf %160, %162 : vector<16x128xf32>
    %164 = arith.addf %156, %163 : vector<16x128xf32>
    %c13 = arith.constant 13 : index
    %165 = memref.load %arg2[%c13] : memref<98xf32, #tpu.memory_space<smem>>
    %c62 = arith.constant 62 : index
    %166 = memref.load %arg2[%c62] : memref<98xf32, #tpu.memory_space<smem>>
    %167 = vector.broadcast %165 : f32 to vector<16x128xf32>
    %168 = arith.mulf %167, %53 : vector<16x128xf32>
    %169 = vector.broadcast %166 : f32 to vector<16x128xf32>
    %170 = arith.mulf %169, %55 : vector<16x128xf32>
    %171 = arith.addf %168, %170 : vector<16x128xf32>
    %172 = arith.addf %164, %171 : vector<16x128xf32>
    %c2_i32_31 = arith.constant 2 : i32
    %173 = tpu.dynamic_rotate %172 by %c2_i32_31 dim 0 : vector<16x128xf32>, i32 -> vector<16x128xf32>
    %c2_i32_32 = arith.constant 2 : i32
    %174 = vector.broadcast %c2_i32_32 : i32 to vector<16x128xi32>
    %175 = arith.cmpi sge, %1, %174 : vector<16x128xi32>
    %cst_33 = arith.constant 0.000000e+00 : f32
    %176 = vector.broadcast %cst_33 : f32 to vector<16x128xf32>
    %177 = arith.select %175, %173, %176 : vector<16x128xi1>, vector<16x128xf32>
    %178 = arith.addf %117, %177 : vector<16x128xf32>
    %c14 = arith.constant 14 : index
    %179 = memref.load %arg2[%c14] : memref<98xf32, #tpu.memory_space<smem>>
    %180 = vector.broadcast %179 : f32 to vector<16x128xf32>
    %181 = arith.mulf %180, %13 : vector<16x128xf32>
    %c63 = arith.constant 63 : index
    %182 = memref.load %arg2[%c63] : memref<98xf32, #tpu.memory_space<smem>>
    %183 = vector.broadcast %182 : f32 to vector<16x128xf32>
    %184 = arith.mulf %183, %15 : vector<16x128xf32>
    %185 = arith.addf %181, %184 : vector<16x128xf32>
    %c15 = arith.constant 15 : index
    %186 = memref.load %arg2[%c15] : memref<98xf32, #tpu.memory_space<smem>>
    %c64 = arith.constant 64 : index
    %187 = memref.load %arg2[%c64] : memref<98xf32, #tpu.memory_space<smem>>
    %188 = vector.broadcast %186 : f32 to vector<16x128xf32>
    %189 = arith.mulf %188, %21 : vector<16x128xf32>
    %190 = vector.broadcast %187 : f32 to vector<16x128xf32>
    %191 = arith.mulf %190, %23 : vector<16x128xf32>
    %192 = arith.addf %189, %191 : vector<16x128xf32>
    %193 = arith.addf %185, %192 : vector<16x128xf32>
    %c16 = arith.constant 16 : index
    %194 = memref.load %arg2[%c16] : memref<98xf32, #tpu.memory_space<smem>>
    %c65 = arith.constant 65 : index
    %195 = memref.load %arg2[%c65] : memref<98xf32, #tpu.memory_space<smem>>
    %196 = vector.broadcast %194 : f32 to vector<16x128xf32>
    %197 = arith.mulf %196, %29 : vector<16x128xf32>
    %198 = vector.broadcast %195 : f32 to vector<16x128xf32>
    %199 = arith.mulf %198, %31 : vector<16x128xf32>
    %200 = arith.addf %197, %199 : vector<16x128xf32>
    %201 = arith.addf %193, %200 : vector<16x128xf32>
    %c17 = arith.constant 17 : index
    %202 = memref.load %arg2[%c17] : memref<98xf32, #tpu.memory_space<smem>>
    %c66 = arith.constant 66 : index
    %203 = memref.load %arg2[%c66] : memref<98xf32, #tpu.memory_space<smem>>
    %204 = vector.broadcast %202 : f32 to vector<16x128xf32>
    %205 = arith.mulf %204, %7 : vector<16x128xf32>
    %206 = vector.broadcast %203 : f32 to vector<16x128xf32>
    %207 = arith.mulf %206, %5 : vector<16x128xf32>
    %208 = arith.addf %205, %207 : vector<16x128xf32>
    %209 = arith.addf %201, %208 : vector<16x128xf32>
    %c18 = arith.constant 18 : index
    %210 = memref.load %arg2[%c18] : memref<98xf32, #tpu.memory_space<smem>>
    %c67 = arith.constant 67 : index
    %211 = memref.load %arg2[%c67] : memref<98xf32, #tpu.memory_space<smem>>
    %212 = vector.broadcast %210 : f32 to vector<16x128xf32>
    %213 = arith.mulf %212, %37 : vector<16x128xf32>
    %214 = vector.broadcast %211 : f32 to vector<16x128xf32>
    %215 = arith.mulf %214, %39 : vector<16x128xf32>
    %216 = arith.addf %213, %215 : vector<16x128xf32>
    %217 = arith.addf %209, %216 : vector<16x128xf32>
    %c19 = arith.constant 19 : index
    %218 = memref.load %arg2[%c19] : memref<98xf32, #tpu.memory_space<smem>>
    %c68 = arith.constant 68 : index
    %219 = memref.load %arg2[%c68] : memref<98xf32, #tpu.memory_space<smem>>
    %220 = vector.broadcast %218 : f32 to vector<16x128xf32>
    %221 = arith.mulf %220, %45 : vector<16x128xf32>
    %222 = vector.broadcast %219 : f32 to vector<16x128xf32>
    %223 = arith.mulf %222, %47 : vector<16x128xf32>
    %224 = arith.addf %221, %223 : vector<16x128xf32>
    %225 = arith.addf %217, %224 : vector<16x128xf32>
    %c20 = arith.constant 20 : index
    %226 = memref.load %arg2[%c20] : memref<98xf32, #tpu.memory_space<smem>>
    %c69 = arith.constant 69 : index
    %227 = memref.load %arg2[%c69] : memref<98xf32, #tpu.memory_space<smem>>
    %228 = vector.broadcast %226 : f32 to vector<16x128xf32>
    %229 = arith.mulf %228, %53 : vector<16x128xf32>
    %230 = vector.broadcast %227 : f32 to vector<16x128xf32>
    %231 = arith.mulf %230, %55 : vector<16x128xf32>
    %232 = arith.addf %229, %231 : vector<16x128xf32>
    %233 = arith.addf %225, %232 : vector<16x128xf32>
    %c1_i32_34 = arith.constant 1 : i32
    %234 = tpu.dynamic_rotate %233 by %c1_i32_34 dim 0 : vector<16x128xf32>, i32 -> vector<16x128xf32>
    %c1_i32_35 = arith.constant 1 : i32
    %235 = vector.broadcast %c1_i32_35 : i32 to vector<16x128xi32>
    %236 = arith.cmpi sge, %1, %235 : vector<16x128xi32>
    %cst_36 = arith.constant 0.000000e+00 : f32
    %237 = vector.broadcast %cst_36 : f32 to vector<16x128xf32>
    %238 = arith.select %236, %234, %237 : vector<16x128xi1>, vector<16x128xf32>
    %239 = arith.addf %178, %238 : vector<16x128xf32>
    %c21 = arith.constant 21 : index
    %240 = memref.load %arg2[%c21] : memref<98xf32, #tpu.memory_space<smem>>
    %241 = vector.broadcast %240 : f32 to vector<16x128xf32>
    %242 = arith.mulf %241, %13 : vector<16x128xf32>
    %c70 = arith.constant 70 : index
    %243 = memref.load %arg2[%c70] : memref<98xf32, #tpu.memory_space<smem>>
    %244 = vector.broadcast %243 : f32 to vector<16x128xf32>
    %245 = arith.mulf %244, %15 : vector<16x128xf32>
    %246 = arith.addf %242, %245 : vector<16x128xf32>
    %c22 = arith.constant 22 : index
    %247 = memref.load %arg2[%c22] : memref<98xf32, #tpu.memory_space<smem>>
    %c71 = arith.constant 71 : index
    %248 = memref.load %arg2[%c71] : memref<98xf32, #tpu.memory_space<smem>>
    %249 = vector.broadcast %247 : f32 to vector<16x128xf32>
    %250 = arith.mulf %249, %21 : vector<16x128xf32>
    %251 = vector.broadcast %248 : f32 to vector<16x128xf32>
    %252 = arith.mulf %251, %23 : vector<16x128xf32>
    %253 = arith.addf %250, %252 : vector<16x128xf32>
    %254 = arith.addf %246, %253 : vector<16x128xf32>
    %c23 = arith.constant 23 : index
    %255 = memref.load %arg2[%c23] : memref<98xf32, #tpu.memory_space<smem>>
    %c72 = arith.constant 72 : index
    %256 = memref.load %arg2[%c72] : memref<98xf32, #tpu.memory_space<smem>>
    %257 = vector.broadcast %255 : f32 to vector<16x128xf32>
    %258 = arith.mulf %257, %29 : vector<16x128xf32>
    %259 = vector.broadcast %256 : f32 to vector<16x128xf32>
    %260 = arith.mulf %259, %31 : vector<16x128xf32>
    %261 = arith.addf %258, %260 : vector<16x128xf32>
    %262 = arith.addf %254, %261 : vector<16x128xf32>
    %c24 = arith.constant 24 : index
    %263 = memref.load %arg2[%c24] : memref<98xf32, #tpu.memory_space<smem>>
    %c73 = arith.constant 73 : index
    %264 = memref.load %arg2[%c73] : memref<98xf32, #tpu.memory_space<smem>>
    %265 = vector.broadcast %263 : f32 to vector<16x128xf32>
    %266 = arith.mulf %265, %7 : vector<16x128xf32>
    %267 = vector.broadcast %264 : f32 to vector<16x128xf32>
    %268 = arith.mulf %267, %5 : vector<16x128xf32>
    %269 = arith.addf %266, %268 : vector<16x128xf32>
    %270 = arith.addf %262, %269 : vector<16x128xf32>
    %c25 = arith.constant 25 : index
    %271 = memref.load %arg2[%c25] : memref<98xf32, #tpu.memory_space<smem>>
    %c74 = arith.constant 74 : index
    %272 = memref.load %arg2[%c74] : memref<98xf32, #tpu.memory_space<smem>>
    %273 = vector.broadcast %271 : f32 to vector<16x128xf32>
    %274 = arith.mulf %273, %37 : vector<16x128xf32>
    %275 = vector.broadcast %272 : f32 to vector<16x128xf32>
    %276 = arith.mulf %275, %39 : vector<16x128xf32>
    %277 = arith.addf %274, %276 : vector<16x128xf32>
    %278 = arith.addf %270, %277 : vector<16x128xf32>
    %c26 = arith.constant 26 : index
    %279 = memref.load %arg2[%c26] : memref<98xf32, #tpu.memory_space<smem>>
    %c75 = arith.constant 75 : index
    %280 = memref.load %arg2[%c75] : memref<98xf32, #tpu.memory_space<smem>>
    %281 = vector.broadcast %279 : f32 to vector<16x128xf32>
    %282 = arith.mulf %281, %45 : vector<16x128xf32>
    %283 = vector.broadcast %280 : f32 to vector<16x128xf32>
    %284 = arith.mulf %283, %47 : vector<16x128xf32>
    %285 = arith.addf %282, %284 : vector<16x128xf32>
    %286 = arith.addf %278, %285 : vector<16x128xf32>
    %c27 = arith.constant 27 : index
    %287 = memref.load %arg2[%c27] : memref<98xf32, #tpu.memory_space<smem>>
    %c76 = arith.constant 76 : index
    %288 = memref.load %arg2[%c76] : memref<98xf32, #tpu.memory_space<smem>>
    %289 = vector.broadcast %287 : f32 to vector<16x128xf32>
    %290 = arith.mulf %289, %53 : vector<16x128xf32>
    %291 = vector.broadcast %288 : f32 to vector<16x128xf32>
    %292 = arith.mulf %291, %55 : vector<16x128xf32>
    %293 = arith.addf %290, %292 : vector<16x128xf32>
    %294 = arith.addf %286, %293 : vector<16x128xf32>
    %295 = arith.addf %239, %294 : vector<16x128xf32>
    %c28 = arith.constant 28 : index
    %296 = memref.load %arg2[%c28] : memref<98xf32, #tpu.memory_space<smem>>
    %297 = vector.broadcast %296 : f32 to vector<16x128xf32>
    %298 = arith.mulf %297, %13 : vector<16x128xf32>
    %c77 = arith.constant 77 : index
    %299 = memref.load %arg2[%c77] : memref<98xf32, #tpu.memory_space<smem>>
    %300 = vector.broadcast %299 : f32 to vector<16x128xf32>
    %301 = arith.mulf %300, %15 : vector<16x128xf32>
    %302 = arith.addf %298, %301 : vector<16x128xf32>
    %c29 = arith.constant 29 : index
    %303 = memref.load %arg2[%c29] : memref<98xf32, #tpu.memory_space<smem>>
    %c78 = arith.constant 78 : index
    %304 = memref.load %arg2[%c78] : memref<98xf32, #tpu.memory_space<smem>>
    %305 = vector.broadcast %303 : f32 to vector<16x128xf32>
    %306 = arith.mulf %305, %21 : vector<16x128xf32>
    %307 = vector.broadcast %304 : f32 to vector<16x128xf32>
    %308 = arith.mulf %307, %23 : vector<16x128xf32>
    %309 = arith.addf %306, %308 : vector<16x128xf32>
    %310 = arith.addf %302, %309 : vector<16x128xf32>
    %c30 = arith.constant 30 : index
    %311 = memref.load %arg2[%c30] : memref<98xf32, #tpu.memory_space<smem>>
    %c79 = arith.constant 79 : index
    %312 = memref.load %arg2[%c79] : memref<98xf32, #tpu.memory_space<smem>>
    %313 = vector.broadcast %311 : f32 to vector<16x128xf32>
    %314 = arith.mulf %313, %29 : vector<16x128xf32>
    %315 = vector.broadcast %312 : f32 to vector<16x128xf32>
    %316 = arith.mulf %315, %31 : vector<16x128xf32>
    %317 = arith.addf %314, %316 : vector<16x128xf32>
    %318 = arith.addf %310, %317 : vector<16x128xf32>
    %c31 = arith.constant 31 : index
    %319 = memref.load %arg2[%c31] : memref<98xf32, #tpu.memory_space<smem>>
    %c80 = arith.constant 80 : index
    %320 = memref.load %arg2[%c80] : memref<98xf32, #tpu.memory_space<smem>>
    %321 = vector.broadcast %319 : f32 to vector<16x128xf32>
    %322 = arith.mulf %321, %7 : vector<16x128xf32>
    %323 = vector.broadcast %320 : f32 to vector<16x128xf32>
    %324 = arith.mulf %323, %5 : vector<16x128xf32>
    %325 = arith.addf %322, %324 : vector<16x128xf32>
    %326 = arith.addf %318, %325 : vector<16x128xf32>
    %c32 = arith.constant 32 : index
    %327 = memref.load %arg2[%c32] : memref<98xf32, #tpu.memory_space<smem>>
    %c81 = arith.constant 81 : index
    %328 = memref.load %arg2[%c81] : memref<98xf32, #tpu.memory_space<smem>>
    %329 = vector.broadcast %327 : f32 to vector<16x128xf32>
    %330 = arith.mulf %329, %37 : vector<16x128xf32>
    %331 = vector.broadcast %328 : f32 to vector<16x128xf32>
    %332 = arith.mulf %331, %39 : vector<16x128xf32>
    %333 = arith.addf %330, %332 : vector<16x128xf32>
    %334 = arith.addf %326, %333 : vector<16x128xf32>
    %c33 = arith.constant 33 : index
    %335 = memref.load %arg2[%c33] : memref<98xf32, #tpu.memory_space<smem>>
    %c82 = arith.constant 82 : index
    %336 = memref.load %arg2[%c82] : memref<98xf32, #tpu.memory_space<smem>>
    %337 = vector.broadcast %335 : f32 to vector<16x128xf32>
    %338 = arith.mulf %337, %45 : vector<16x128xf32>
    %339 = vector.broadcast %336 : f32 to vector<16x128xf32>
    %340 = arith.mulf %339, %47 : vector<16x128xf32>
    %341 = arith.addf %338, %340 : vector<16x128xf32>
    %342 = arith.addf %334, %341 : vector<16x128xf32>
    %c34 = arith.constant 34 : index
    %343 = memref.load %arg2[%c34] : memref<98xf32, #tpu.memory_space<smem>>
    %c83 = arith.constant 83 : index
    %344 = memref.load %arg2[%c83] : memref<98xf32, #tpu.memory_space<smem>>
    %345 = vector.broadcast %343 : f32 to vector<16x128xf32>
    %346 = arith.mulf %345, %53 : vector<16x128xf32>
    %347 = vector.broadcast %344 : f32 to vector<16x128xf32>
    %348 = arith.mulf %347, %55 : vector<16x128xf32>
    %349 = arith.addf %346, %348 : vector<16x128xf32>
    %350 = arith.addf %342, %349 : vector<16x128xf32>
    %c15_i32 = arith.constant 15 : i32
    %351 = tpu.dynamic_rotate %350 by %c15_i32 dim 0 : vector<16x128xf32>, i32 -> vector<16x128xf32>
    %c14_i32_37 = arith.constant 14 : i32
    %352 = vector.broadcast %c14_i32_37 : i32 to vector<16x128xi32>
    %353 = arith.cmpi sle, %1, %352 : vector<16x128xi32>
    %cst_38 = arith.constant 0.000000e+00 : f32
    %354 = vector.broadcast %cst_38 : f32 to vector<16x128xf32>
    %355 = arith.select %353, %351, %354 : vector<16x128xi1>, vector<16x128xf32>
    %356 = arith.addf %295, %355 : vector<16x128xf32>
    %c35 = arith.constant 35 : index
    %357 = memref.load %arg2[%c35] : memref<98xf32, #tpu.memory_space<smem>>
    %358 = vector.broadcast %357 : f32 to vector<16x128xf32>
    %359 = arith.mulf %358, %13 : vector<16x128xf32>
    %c84 = arith.constant 84 : index
    %360 = memref.load %arg2[%c84] : memref<98xf32, #tpu.memory_space<smem>>
    %361 = vector.broadcast %360 : f32 to vector<16x128xf32>
    %362 = arith.mulf %361, %15 : vector<16x128xf32>
    %363 = arith.addf %359, %362 : vector<16x128xf32>
    %c36 = arith.constant 36 : index
    %364 = memref.load %arg2[%c36] : memref<98xf32, #tpu.memory_space<smem>>
    %c85 = arith.constant 85 : index
    %365 = memref.load %arg2[%c85] : memref<98xf32, #tpu.memory_space<smem>>
    %366 = vector.broadcast %364 : f32 to vector<16x128xf32>
    %367 = arith.mulf %366, %21 : vector<16x128xf32>
    %368 = vector.broadcast %365 : f32 to vector<16x128xf32>
    %369 = arith.mulf %368, %23 : vector<16x128xf32>
    %370 = arith.addf %367, %369 : vector<16x128xf32>
    %371 = arith.addf %363, %370 : vector<16x128xf32>
    %c37 = arith.constant 37 : index
    %372 = memref.load %arg2[%c37] : memref<98xf32, #tpu.memory_space<smem>>
    %c86 = arith.constant 86 : index
    %373 = memref.load %arg2[%c86] : memref<98xf32, #tpu.memory_space<smem>>
    %374 = vector.broadcast %372 : f32 to vector<16x128xf32>
    %375 = arith.mulf %374, %29 : vector<16x128xf32>
    %376 = vector.broadcast %373 : f32 to vector<16x128xf32>
    %377 = arith.mulf %376, %31 : vector<16x128xf32>
    %378 = arith.addf %375, %377 : vector<16x128xf32>
    %379 = arith.addf %371, %378 : vector<16x128xf32>
    %c38 = arith.constant 38 : index
    %380 = memref.load %arg2[%c38] : memref<98xf32, #tpu.memory_space<smem>>
    %c87 = arith.constant 87 : index
    %381 = memref.load %arg2[%c87] : memref<98xf32, #tpu.memory_space<smem>>
    %382 = vector.broadcast %380 : f32 to vector<16x128xf32>
    %383 = arith.mulf %382, %7 : vector<16x128xf32>
    %384 = vector.broadcast %381 : f32 to vector<16x128xf32>
    %385 = arith.mulf %384, %5 : vector<16x128xf32>
    %386 = arith.addf %383, %385 : vector<16x128xf32>
    %387 = arith.addf %379, %386 : vector<16x128xf32>
    %c39 = arith.constant 39 : index
    %388 = memref.load %arg2[%c39] : memref<98xf32, #tpu.memory_space<smem>>
    %c88 = arith.constant 88 : index
    %389 = memref.load %arg2[%c88] : memref<98xf32, #tpu.memory_space<smem>>
    %390 = vector.broadcast %388 : f32 to vector<16x128xf32>
    %391 = arith.mulf %390, %37 : vector<16x128xf32>
    %392 = vector.broadcast %389 : f32 to vector<16x128xf32>
    %393 = arith.mulf %392, %39 : vector<16x128xf32>
    %394 = arith.addf %391, %393 : vector<16x128xf32>
    %395 = arith.addf %387, %394 : vector<16x128xf32>
    %c40 = arith.constant 40 : index
    %396 = memref.load %arg2[%c40] : memref<98xf32, #tpu.memory_space<smem>>
    %c89 = arith.constant 89 : index
    %397 = memref.load %arg2[%c89] : memref<98xf32, #tpu.memory_space<smem>>
    %398 = vector.broadcast %396 : f32 to vector<16x128xf32>
    %399 = arith.mulf %398, %45 : vector<16x128xf32>
    %400 = vector.broadcast %397 : f32 to vector<16x128xf32>
    %401 = arith.mulf %400, %47 : vector<16x128xf32>
    %402 = arith.addf %399, %401 : vector<16x128xf32>
    %403 = arith.addf %395, %402 : vector<16x128xf32>
    %c41 = arith.constant 41 : index
    %404 = memref.load %arg2[%c41] : memref<98xf32, #tpu.memory_space<smem>>
    %c90 = arith.constant 90 : index
    %405 = memref.load %arg2[%c90] : memref<98xf32, #tpu.memory_space<smem>>
    %406 = vector.broadcast %404 : f32 to vector<16x128xf32>
    %407 = arith.mulf %406, %53 : vector<16x128xf32>
    %408 = vector.broadcast %405 : f32 to vector<16x128xf32>
    %409 = arith.mulf %408, %55 : vector<16x128xf32>
    %410 = arith.addf %407, %409 : vector<16x128xf32>
    %411 = arith.addf %403, %410 : vector<16x128xf32>
    %c14_i32_39 = arith.constant 14 : i32
    %412 = tpu.dynamic_rotate %411 by %c14_i32_39 dim 0 : vector<16x128xf32>, i32 -> vector<16x128xf32>
    %c13_i32_40 = arith.constant 13 : i32
    %413 = vector.broadcast %c13_i32_40 : i32 to vector<16x128xi32>
    %414 = arith.cmpi sle, %1, %413 : vector<16x128xi32>
    %cst_41 = arith.constant 0.000000e+00 : f32
    %415 = vector.broadcast %cst_41 : f32 to vector<16x128xf32>
    %416 = arith.select %414, %412, %415 : vector<16x128xi1>, vector<16x128xf32>
    %417 = arith.addf %356, %416 : vector<16x128xf32>
    %c42 = arith.constant 42 : index
    %418 = memref.load %arg2[%c42] : memref<98xf32, #tpu.memory_space<smem>>
    %419 = vector.broadcast %418 : f32 to vector<16x128xf32>
    %420 = arith.mulf %419, %13 : vector<16x128xf32>
    %c91 = arith.constant 91 : index
    %421 = memref.load %arg2[%c91] : memref<98xf32, #tpu.memory_space<smem>>
    %422 = vector.broadcast %421 : f32 to vector<16x128xf32>
    %423 = arith.mulf %422, %15 : vector<16x128xf32>
    %424 = arith.addf %420, %423 : vector<16x128xf32>
    %c43 = arith.constant 43 : index
    %425 = memref.load %arg2[%c43] : memref<98xf32, #tpu.memory_space<smem>>
    %c92 = arith.constant 92 : index
    %426 = memref.load %arg2[%c92] : memref<98xf32, #tpu.memory_space<smem>>
    %427 = vector.broadcast %425 : f32 to vector<16x128xf32>
    %428 = arith.mulf %427, %21 : vector<16x128xf32>
    %429 = vector.broadcast %426 : f32 to vector<16x128xf32>
    %430 = arith.mulf %429, %23 : vector<16x128xf32>
    %431 = arith.addf %428, %430 : vector<16x128xf32>
    %432 = arith.addf %424, %431 : vector<16x128xf32>
    %c44 = arith.constant 44 : index
    %433 = memref.load %arg2[%c44] : memref<98xf32, #tpu.memory_space<smem>>
    %c93 = arith.constant 93 : index
    %434 = memref.load %arg2[%c93] : memref<98xf32, #tpu.memory_space<smem>>
    %435 = vector.broadcast %433 : f32 to vector<16x128xf32>
    %436 = arith.mulf %435, %29 : vector<16x128xf32>
    %437 = vector.broadcast %434 : f32 to vector<16x128xf32>
    %438 = arith.mulf %437, %31 : vector<16x128xf32>
    %439 = arith.addf %436, %438 : vector<16x128xf32>
    %440 = arith.addf %432, %439 : vector<16x128xf32>
    %c45 = arith.constant 45 : index
    %441 = memref.load %arg2[%c45] : memref<98xf32, #tpu.memory_space<smem>>
    %c94 = arith.constant 94 : index
    %442 = memref.load %arg2[%c94] : memref<98xf32, #tpu.memory_space<smem>>
    %443 = vector.broadcast %441 : f32 to vector<16x128xf32>
    %444 = arith.mulf %443, %7 : vector<16x128xf32>
    %445 = vector.broadcast %442 : f32 to vector<16x128xf32>
    %446 = arith.mulf %445, %5 : vector<16x128xf32>
    %447 = arith.addf %444, %446 : vector<16x128xf32>
    %448 = arith.addf %440, %447 : vector<16x128xf32>
    %c46 = arith.constant 46 : index
    %449 = memref.load %arg2[%c46] : memref<98xf32, #tpu.memory_space<smem>>
    %c95 = arith.constant 95 : index
    %450 = memref.load %arg2[%c95] : memref<98xf32, #tpu.memory_space<smem>>
    %451 = vector.broadcast %449 : f32 to vector<16x128xf32>
    %452 = arith.mulf %451, %37 : vector<16x128xf32>
    %453 = vector.broadcast %450 : f32 to vector<16x128xf32>
    %454 = arith.mulf %453, %39 : vector<16x128xf32>
    %455 = arith.addf %452, %454 : vector<16x128xf32>
    %456 = arith.addf %448, %455 : vector<16x128xf32>
    %c47 = arith.constant 47 : index
    %457 = memref.load %arg2[%c47] : memref<98xf32, #tpu.memory_space<smem>>
    %c96 = arith.constant 96 : index
    %458 = memref.load %arg2[%c96] : memref<98xf32, #tpu.memory_space<smem>>
    %459 = vector.broadcast %457 : f32 to vector<16x128xf32>
    %460 = arith.mulf %459, %45 : vector<16x128xf32>
    %461 = vector.broadcast %458 : f32 to vector<16x128xf32>
    %462 = arith.mulf %461, %47 : vector<16x128xf32>
    %463 = arith.addf %460, %462 : vector<16x128xf32>
    %464 = arith.addf %456, %463 : vector<16x128xf32>
    %c48 = arith.constant 48 : index
    %465 = memref.load %arg2[%c48] : memref<98xf32, #tpu.memory_space<smem>>
    %c97 = arith.constant 97 : index
    %466 = memref.load %arg2[%c97] : memref<98xf32, #tpu.memory_space<smem>>
    %467 = vector.broadcast %465 : f32 to vector<16x128xf32>
    %468 = arith.mulf %467, %53 : vector<16x128xf32>
    %469 = vector.broadcast %466 : f32 to vector<16x128xf32>
    %470 = arith.mulf %469, %55 : vector<16x128xf32>
    %471 = arith.addf %468, %470 : vector<16x128xf32>
    %472 = arith.addf %464, %471 : vector<16x128xf32>
    %c13_i32_42 = arith.constant 13 : i32
    %473 = tpu.dynamic_rotate %472 by %c13_i32_42 dim 0 : vector<16x128xf32>, i32 -> vector<16x128xf32>
    %c12_i32_43 = arith.constant 12 : i32
    %474 = vector.broadcast %c12_i32_43 : i32 to vector<16x128xi32>
    %475 = arith.cmpi sle, %1, %474 : vector<16x128xi32>
    %cst_44 = arith.constant 0.000000e+00 : f32
    %476 = vector.broadcast %cst_44 : f32 to vector<16x128xf32>
    %477 = arith.select %475, %473, %476 : vector<16x128xi1>, vector<16x128xf32>
    %478 = arith.addf %417, %477 : vector<16x128xf32>
    %479 = arith.negf %478 : vector<16x128xf32>
    %480 = math.exp %479 : vector<16x128xf32>
    %cst_45 = arith.constant 1.000000e+00 : f32
    %481 = vector.broadcast %cst_45 : f32 to vector<16x128xf32>
    %482 = arith.addf %481, %480 : vector<16x128xf32>
    %483 = arith.divf %481, %482 : vector<16x128xf32>
    %c0_46 = arith.constant 0 : index
    %c0_47 = arith.constant 0 : index
    %c0_48 = arith.constant 0 : index
    %c0_49 = arith.constant 0 : index
    %484 = vector.load %arg3[%c0_46, %c0_47, %c0_48, %c0_49] : memref<1x1x16x128xf32, #tpu.memory_space<vmem>>, vector<1x1x16x128xf32>
    %485 = vector.shape_cast %484 : vector<1x1x16x128xf32> to vector<16x128xf32>
    %486 = vector.shape_cast %483 : vector<16x128xf32> to vector<1x1x16x128xf32>
    tpu.vector_store %arg3[%c0_46, %c0_47, %c0_48, %c0_49], %486 {strides = array<i32>} : memref<1x1x16x128xf32, #tpu.memory_space<vmem>>, vector<1x1x16x128xf32>,
    return
  }
  func.func @transform_0(%arg0: i32) -> (i32, i32, i32, i32) {
    %c0_i32 = arith.constant 0 : i32
    %c0_i32_0 = arith.constant 0 : i32
    %c0_i32_1 = arith.constant 0 : i32
    %c0_i32_2 = arith.constant 0 : i32
    return %arg0, %c0_i32, %c0_i32_0, %c0_i32_1 : i32, i32, i32, i32
  }
  func.func @transform_1(%arg0: i32) -> i32 {
    %c0_i32 = arith.constant 0 : i32
    %c0_i32_0 = arith.constant 0 : i32
    return %c0_i32 : i32
  }
  func.func @transform_2(%arg0: i32) -> (i32, i32, i32, i32) {
    %c0_i32 = arith.constant 0 : i32
    %c0_i32_0 = arith.constant 0 : i32
    %c0_i32_1 = arith.constant 0 : i32
    %c0_i32_2 = arith.constant 0 : i32
    return %arg0, %c0_i32, %c0_i32_0, %c0_i32_1 : i32, i32, i32, i32
  }
}

</mosaic_0001>

<bundles_post_ra>
// kernel: tpu_custom_call.1
= control target key start
LH: loop header
LB: loop body
LE: loop exit
PB: predicated region body
PF: predicated region fallthrough
CT: control target
= control target key end

     0   :  { %s2520_s0 = inlined_call_operand.hbm [shape: f32[2,4,16,128], index: 0, kind: input, shape index: {}]   ;;  %s2521_s1 = inlined_call_operand.vmem [shape: f32[98], index: 1, kind: input, shape index: {}]   ;;  %s2522_s2 = inlined_call_operand.hbm [shape: f32[2,1,16,128], index: 2, kind: output, shape index: {}]  }
   0x1   :  { %2670 = sst [smem:[#allocation101_spill]] %s2520_s0 }
   0x2   :  { %2671 = sst [smem:[#allocation102_spill]] %s2521_s1 }
   0x3   :  { %2672 = sst [smem:[#allocation103_spill]] %s2522_s2 }
   0x4   :  { %7 = vsyncpa [#allocation3], 0 }
   0x5   :  { %9 = vsyncpa [#allocation3 + $0x1], 0 }
   0x6   :  { %10 = vsyncpa [#allocation5], 0 }
   0x7   :  { %11 = vsyncpa [#allocation4], 0 }
   0x8   :  { %13 = vsyncpa [#allocation4 + $0x1], 0  ;;  %s1373_s9 = smov 0   ;;  %s1375_s10 = smov 0  }
   0x9   :  { %s1377_s11 = smov 0   ;;  %s1379_s12 = smov 0  }
   0xa LB: > { %2673 = sst [smem:[#allocation11_spill]] %s1331_s9  ;;  %s1394_s13 = sadd.s32 4294967295, %s1343_s12   ;;  %s1343_s12 = sphi %s1379_s12, %s3041_s12   ;;  %s1339_s11 = sphi %s1377_s11, %s3044_s11   ;;  %s1335_s10 = sphi %s1375_s10, %s3043_s10   ;;  %s1331_s9 = sphi %s1373_s9, %s3042_s9  }
   0xb   : > { %2674 = sst [smem:[#allocation12_spill]] %s1335_s10  ;;  %s1036_s14 = sadd.s32 4294967294, %s1343_s12  }
   0xc   : > { %2675 = sst [smem:[#allocation13_spill]] %s1339_s11  ;;  %s1398_s15 = sadd.s32 1, %s1343_s12  }
   0xd   : > { %2676 = sst [smem:[#allocation14_spill]] %s1343_s12  ;;  %s26_s16 = sadd.s32 1, %s1339_s11 }
   0xe   : > { %2677 = sst [smem:[#allocation15_spill]] %s1394_s13  ;;  %s23_s17 = ssub.s32 %s1343_s12, %s1398_s15 }
   0xf   : > { %2678 = sst [smem:[#allocation16_spill]] %s1398_s15  ;;  %p33_p0 = scmp.ne.s32.totalorder %s1339_s11, %s1335_s10 }
  0x10   : > { %p24_p1 = scmp.eq.s32.totalorder %s23_s17, 0  ;;  %p34_p2 = scmp.eq.s32.totalorder %s1343_s12, 0 }
  0x11   : > { %p39_p3 = scmp.ne.s32.totalorder %s1335_s10, %s1331_s9  ;;  %p2524_p4 = scmp.eq.s32.totalorder %s1394_s13, 0 }
  0x12   : > { %s1410_s18 = scalar_select %p24_p1, %s1339_s11, %s26_s16  }
  0x13   : > { %p1412_p5 = por %p34_p2, %p33_p0  ;;  %p1418_p6 = por %p2524_p4, %p39_p3 }
  0x14   : > { %2679 = sst [smem:[#allocation17_spill]] %s1410_s18  ;;  %p84_p7 = scmp.eq.s32.totalorder %s1394_s13, 1 }
  0x15   : > { %s2681_s20 = scalar_select %p1418_p6, 1, 0 }
  0x16   : > { %p90_p8 = scmp.eq.s32.totalorder %s1036_s14, 1  ;;  %p1037_p9 = scmp.ge.s32.totalorder %s1343_s12, 1 }
  0x17   : > { %p97_p10 = scmp.lt.s32.totalorder %s1343_s12, 3  ;;  %p1425_p11 = por %p84_p7, %p33_p0 }
  0x18   : > { %p1429_p12 = por %p90_p8, %p39_p3  ;;  %s2687_s1 = sld [smem:[#allocation102_spill]] }
  0x19   : > { %s2682_s21 = scalar_select %p1425_p11, 1, 0 }
  0x1a   : > { %s2684_s22 = scalar_select %p1429_p12, 1, 0 }
  0x1b   : > { %2683 = sst [smem:[#allocation18_spill]] %s2682_s21  ;;  %p1433_p13 = pnand %p1037_p9, %p97_p10 }
  0x1c   : > { %2685 = sst [smem:[#allocation19_spill]] %s2684_s22  ;;  %p1174_p2 = scmp.lt.s32.totalorder %s1343_s12, 2 }
  0x1d   : > { %p1161_p1 = pneg %p1433_p13  ;;  %s121_s28 = sand.u32 1, %s1339_s11  }
  0x1e   : > { %s110_s26 = sshll.u32 %s2687_s1, 4  ;;  %p1453_p3 = pnand %p1174_p2, %p1412_p5  ;;  %s111_s26 = int_to_ptr.vmem [resolvable:$true] %s110_s26 }
  0x1f   : > { %p1446_p7 = pnand %p1161_p1, %p2524_p4  ;;  %s1040_s30 = sshll.u32 %s121_s28, 6 }
  0x20   : > { %s1228_s3 = scalar_lea.vmem %s111_s26, 16  ;;  %p1236_p12 = scmp.lt.s32.totalorder %s111_s26, %s111_s26 }
  0x21   : > { %p1229_p8 = scmp.ne.s32.totalorder %s111_s26, %s1228_s3  ;;  %p1230_p9 = pneg %p1446_p7 }
  0x22   : > { %p1237_p11 = scmp.lt.s32.totalorder %s1228_s3, %s1228_s3 }
  0x23   : > { %p1231_p10 = pnand %p1230_p9, %p1229_p8 }
  0x24   : > { %p1238_p1 = por %p1237_p11, %p1236_p12 }
  0x25   : > { %p1232_p0 = pneg %p1231_p10 }
  0x27   : > { %p1239_p4 = pnand %p1238_p1, %p1232_p0 }
  0x29   : > { %1242 = shalt.err (!%p1239_p4)
}
  0x2a   : > { %s1345_s4 = smov [#allocation6]   ;;  %s1151_s5 = sshll.u32 %s1343_s12, 10 }
  0x2b   : > { %1164 = dma.vmem_to_smem (!%p1446_p7), %s111_s26, 16, %s1345_s4, [#allocation5]  }
  0x2c   : > { %s125_s6 = scalar_lea.vmem [#allocation2], %s1040_s30  ;;  %s2690_s0 = sld [smem:[#allocation101_spill]] }
  0x2d   : > { %s132_s7 = sshll.u32 %s125_s6, 4  ;;  %s1469_s17 = scalar_lea.sflag [#allocation3], %s121_s28  ;;  %s1467_s7 = int_to_ptr.vmem [resolvable:$true] %s132_s7 }
  0x2e   : > { %p1245_p5 = pneg %p1453_p3 }
  0x32   : > { %s1465_s16 = scalar_lea.hbm %s2690_s0, %s1151_s5  ;;  %s1248_s26 = scalar_lea.hbm %s2690_s0, 2048 }
  0x33   : > { %s1243_s19 = scalar_lea.hbm %s1465_s16, 1024  ;;  %p1249_p0 = scmp.lt.u32.totalorder %s1465_s16, %s2690_s0 }
  0x34   : > { %p1244_p4 = scmp.ne.s32.totalorder %s1465_s16, %s1243_s19  ;;  %p1250_p2 = scmp.lt.u32.totalorder %s1248_s26, %s1243_s19 }
  0x35   : > { %p1252_p8 = scmp.lt.u32.totalorder %s1243_s19, %s1465_s16 }
  0x36   : > { %p1246_p11 = pnand %p1245_p5, %p1244_p4  ;;  %p1251_p7 = por %p1250_p2, %p1249_p0 }
  0x38   : > { %p1247_p12 = pneg %p1246_p11  ;;  %p1253_p9 = por %p1252_p8, %p1251_p7 }
  0x3a   : > { %p1254_p10 = pnand %p1253_p9, %p1247_p12 }
  0x3c   : > { %1257 = shalt.err (!%p1254_p10)
}
  0x3d   : > { %s1258_s28 = scalar_lea.vmem %s1467_s7, 1024  ;;  %s1346_s3 = smov [#allocation2]  }
  0x3e   : > { %p1259_p1 = scmp.ne.s32.totalorder %s1467_s7, %s1258_s28  ;;  %s1263_s4 = sshll.u32 %s1346_s3, 4  ;;  %s1264_s4 = int_to_ptr.vmem [resolvable:$false] %s1263_s4 }
  0x3f   : > { %s1265_s5 = scalar_lea.vmem %s1264_s4, 2048  ;;  %p1266_p6 = scmp.lt.s32.totalorder %s1467_s7, %s1264_s4 }
  0x40   : > { %p1261_p4 = pnand %p1259_p1, %p1245_p5  ;;  %p1267_p0 = scmp.lt.s32.totalorder %s1265_s5, %s1258_s28 }
  0x42   : > { %p1262_p11 = pneg %p1261_p4  ;;  %p1268_p2 = por %p1267_p0, %p1266_p6 }
  0x44   : > { %p1269_p7 = pnand %p1268_p2, %p1262_p11 }
  0x46   : > { %1272 = shalt.err (!%p1269_p7)
}
  0x47   : > { %s1347_s6 = smov 128   ;;  %s1348_s8 = smov 8  }
  0x48   : > { %1168 = dma.hbm_to_vmem [thread:$0]  (!%p1453_p3), %s1465_s16, 1024, %s1467_s7, %s1469_s17, %s1347_s6, %s1347_s6, %s1348_s8  }
  0x49   : > { %144 = sbr.rel (%p1433_p13) target bundleno = 396 (0x18c), region = 28 }
  0x50   : > { %s1500_s14 = sand.u32 1, %s1335_s10   ;;  %p2692_p6 = scmp.ne.s32.totalorder %s2681_s20, 0 }
  0x51   : > { %2691 = sst [smem:[#allocation20_spill]] %s1500_s14  ;;  %s1044_s19 = sshll.u32 %s1500_s14, 6 }
  0x52   : > { %s147_s24 = scalar_lea.sflag [#allocation3], %s1500_s14  ;;  %s150_s25 = scalar_lea.vmem [#allocation2], %s1044_s19 }
  0x53   : > { %1318 = dma.done.wait (%p2692_p6), %s147_s24, 1024  }
  0x54   : > { %1320 = vsyncadd (%p2692_p6), %s147_s24, 4294966272  ;;  %p2693_p5 = scmp.eq.s32.totalorder %s1394_s13, 0 }
  0x56   : > { %1322 = dma.done.wait (%p2693_p5), [#allocation5], 16   ;;  %p2694_p3 = pmov %p2693_p5 }
  0x58   : > { %1324 = vsyncadd (%p2694_p3), [#allocation5], 4294967280 }
  0x59   : > { %159 = sfence }
  0x5a   : > { %v181_v0 = vld [vmem:[%s150_s25] sm:$0xff]  ;;  %v183_v1 = vld [vmem:[%s150_s25 + $0x10] sm:$0xff]  ;;  %v182_v6 = vld [vmem:[%s150_s25 + $0x8] sm:$0xff]  ;;  %s1349_s20 = smov 3   ;;  %s1350_s23 = smov 2  }
  0x5b   : > { %v185_v2 = vld [vmem:[%s150_s25 + $0x20] sm:$0xff]  ;;  %v187_v3 = vld [vmem:[%s150_s25 + $0x30] sm:$0xff]  ;;  %v189_v5 = vadd.f32 %v183_v1, %v181_v0  ;;  %v184_v7 = vld [vmem:[%s150_s25 + $0x18] sm:$0xff]  ;;  %s1351_s29 = smov 1   ;;  %s1530_s7 = sld [smem:[#allocation6 + $0x3]] }
  0x5c   : > { %v195_v4 = vmax.f32 %v181_v0, %v185_v2  ;;  %v196_v8 = vmax.f32 %v183_v1, %v187_v3  ;;  %v186_v9 = vld [vmem:[%s150_s25 + $0x28] sm:$0xff]  ;;  %v188_v10 = vld [vmem:[%s150_s25 + $0x38] sm:$0xff]  ;;  %v192_v11 = vadd.f32 %v184_v7, %v182_v6  ;;  %s1532_s16 = sld [smem:[#allocation6 + $0x34]]  ;;  %s1535_s17 = sld [smem:[#allocation6 + $0xa]] }
  0x5d   : > { %v198_v12 = vmax.f32 %v182_v6, %v186_v9  ;;  %v199_v13 = vmax.f32 %v184_v7, %v188_v10  ;;  %v190_v14 = vadd.f32 %v189_v5, %v185_v2  ;;  %s1537_s26 = sld [smem:[#allocation6 + $0x3b]]  ;;  %s1539_s27 = sld [smem:[#allocation6 + $0x11]] }
  0x5e   : > { %v1512_v15 = vmax.f32 %v195_v4, %v196_v8  ;;  %v193_v16 = vadd.f32 %v192_v11, %v186_v9  ;;  %s1541_s30 = sld [smem:[#allocation6 + $0x42]]  ;;  %s1543_s28 = sld [smem:[#allocation6 + $0x18]] }
  0x5f   : > { %v191_v17 = vadd.f32 %v190_v14, %v187_v3  ;;  %v1515_v18 = vmax.f32 %v198_v12, %v199_v13  ;;  %s1545_s3 = sld [smem:[#allocation6 + $0x49]]  ;;  %s1548_s4 = sld [smem:[#allocation6 + $0x1f]]  ;;  %v176_v14 = vlaneseq }
  0x60   : > { %207 = vrot.lane.b32.xlu1 %v1512_v15, %s1349_s20  ;;  %v194_v19 = vadd.f32 %v193_v16, %v188_v10  ;;  %s1550_s5 = sld [smem:[#allocation6 + $0x50]]  ;;  %s1352_s6 = smov 127  }
  0x61   : > { %v1517_v20 = vmul.f32 0.25, %v191_v17  ;;  %v317_v22 = vstv %s1530_s7  ;;  %s1578_s8 = sld [smem:[#allocation6 + $0x26]]  ;;  %s1580_s19 = sld [smem:[#allocation6 + $0x57]]  ;;  %v1751_v16 = vshrl.u32 %v176_v14, 7 }
  0x62   : > { %v1520_v21 = vmul.f32 0.25, %v194_v19  ;;  %v320_v23 = vstv %s1532_s16  ;;  %v410_v26 = vstv %s1535_s17  ;;  %s1585_s24 = sld [smem:[#allocation6 + $0x2d]]  ;;  %s1353_s25 = smov 126  }
  0x63   : > { %203 = vrot.lane.b32.xlu0 %v1517_v20, %s1349_s20  ;;  %v322_v25 = vmul.f32 %v320_v23, %v1515_v18  ;;  %v413_v27 = vstv %s1537_s26  ;;  %v503_v30 = vstv %s1539_s27  ;;  %v321_v56 = vmul.f32 %v320_v23, %v1512_v15  ;;  %s1641_s7 = sld [smem:[#allocation6 + $0x38]]  ;;  %s1643_s16 = sld [smem:[#allocation6 + $0x3f]]  ;;  %2752 = vst [vmem:[#allocation78_spill] sm:$0xff] %v1751_v16 }
  0x64   : > { %209 = vrot.lane.b32.xlu1 %v1515_v18, %s1349_s20  ;;  %v319_v24 = vmul.f32 %v317_v22, %v1520_v21  ;;  %v412_v28 = vmul.f32 %v410_v26, %v1520_v21  ;;  %v415_v29 = vmul.f32 %v413_v27, %v1515_v18  ;;  %v506_v31 = vstv %s1541_s30  ;;  %s1645_s17 = sld [smem:[#allocation6 + $0x46]]  ;;  %s1647_s26 = sld [smem:[#allocation6 + $0x4d]] }
  0x65   : > { %v505_v33 = vmul.f32 %v503_v30, %v1520_v21  ;;  %v508_v34 = vmul.f32 %v506_v31, %v1515_v18  ;;  %v596_v35 = vstv %s1543_s28  ;;  %v599_v38 = vstv %s1545_s3  ;;  %s1649_s27 = sld [smem:[#allocation6 + $0x54]]  ;;  %s1651_s30 = sld [smem:[#allocation6 + $0x5b]] }
  0x66   : > { %v1565_v32 = vadd.f32 %v322_v25, %v319_v24  ;;  %v1570_v36 = vadd.f32 %v415_v29, %v412_v28  ;;  %v598_v37 = vmul.f32 %v596_v35, %v1520_v21  ;;  %v680_v39 = vstv %s1548_s4  ;;  %s1653_s28 = sld [smem:[#allocation6]]  ;;  %s1655_s3 = sld [smem:[#allocation6 + $0x7]] }
  0x67   : > { %205 = vrot.lane.b32.xlu0 %v1520_v21, %s1349_s20  ;;  %v1575_v40 = vadd.f32 %v508_v34, %v505_v33  ;;  %v601_v41 = vmul.f32 %v599_v38, %v1515_v18  ;;  %v682_v42 = vmul.f32 %v680_v39, %v1520_v21  ;;  %v683_v43 = vstv %s1550_s5  ;;  %s1137_s20 = sld [smem:[#allocation6 + $0x5e]]  ;;  %s1659_s5 = sld [smem:[#allocation6 + $0x15]] }
  0x68   : > { %218 = vrot.lane.b32.xlu1 %v1520_v21, %s1350_s23  ;;  %v685_v45 = vmul.f32 %v683_v43, %v1515_v18  ;;  %v773_v47 = vstv %s1578_s8  ;;  %v776_v48 = vstv %s1580_s19  ;;  %v866_v51 = vstv %s1585_s24  ;;  %s1657_s4 = sld [smem:[#allocation6 + $0xe]]  ;;  %s1663_s8 = sld [smem:[#allocation6 + $0x23]] }
  0x69   : > { %v1588_v44 = vadd.f32 %v601_v41, %v598_v37  ;;  %v775_v49 = vmul.f32 %v773_v47, %v1520_v21  ;;  %v778_v50 = vmul.f32 %v776_v48, %v1515_v18  ;;  %v868_v52 = vmul.f32 %v866_v51, %v1520_v21  ;;  %2700 = sst [smem:[#allocation26_spill]] %s1641_s7  ;;  %s1665_s19 = sld [smem:[#allocation6 + $0x2a]] }
  0x6a   : > { %v1591_v46 = vadd.f32 %v685_v45, %v682_v42  ;;  %v414_v57 = vmul.f32 %v413_v27, %v1512_v15  ;;  %v507_v58 = vmul.f32 %v506_v31, %v1512_v15  ;;  %v600_v59 = vmul.f32 %v599_v38, %v1512_v15  ;;  %2701 = sst [smem:[#allocation27_spill]] %s1643_s16  ;;  %s1667_s24 = sld [smem:[#allocation6 + $0x1]] }
  0x6b   : > { %216 = vrot.lane.b32.xlu0 %v1517_v20, %s1350_s23  ;;  %v1602_v54 = vadd.f32 %v778_v50, %v775_v49  ;;  %v684_v60 = vmul.f32 %v683_v43, %v1512_v15  ;;  %v777_v62 = vmul.f32 %v776_v48, %v1512_v15  ;;  %v318_v0 = vmul.f32 %v317_v22, %v1517_v20  ;;  %2702 = sst [smem:[#allocation28_spill]] %s1645_s17  ;;  %s1677_s1 = sld [smem:[#allocation6 + $0x24]] }
  0x6c   : > { %222 = vrot.lane.b32.xlu1 %v1515_v18, %s1350_s23  ;;  %v411_v1 = vmul.f32 %v410_v26, %v1517_v20  ;;  %v504_v2 = vmul.f32 %v503_v30, %v1517_v20  ;;  %v597_v3 = vmul.f32 %v596_v35, %v1517_v20  ;;  %v681_v4 = vmul.f32 %v680_v39, %v1517_v20  ;;  %2703 = sst [smem:[#allocation29_spill]] %s1647_s26  ;;  %s1675_s0 = sld [smem:[#allocation6 + $0x1d]] }
  0x6d   : > { %v869_v53 = vstv %s1137_s20  ;;  %v1621_v5 = vadd.f32 %v321_v56, %v318_v0  ;;  %v774_v6 = vmul.f32 %v773_v47, %v1517_v20  ;;  %v867_v7 = vmul.f32 %v866_v51, %v1517_v20  ;;  %2704 = sst [smem:[#allocation30_spill]] %s1649_s27  ;;  %s1679_s18 = sld [smem:[#allocation6 + $0x2b]] }
  0x6e   : > { %v871_v55 = vmul.f32 %v869_v53, %v1515_v18  ;;  %v870_v63 = vmul.f32 %v869_v53, %v1512_v15  ;;  %v1626_v8 = vadd.f32 %v414_v57, %v411_v1  ;;  %v1628_v9 = vadd.f32 %v507_v58, %v504_v2  ;;  %2705 = sst [smem:[#allocation31_spill]] %s1651_s30  ;;  %s1671_s20 = sld [smem:[#allocation6 + $0xf]] }
  0x6f   : > { %220 = vrot.lane.b32.xlu0 %v1512_v15, %s1350_s23  ;;  %s1354_s23 = smov 125   ;;  %v1630_v10 = vadd.f32 %v600_v59, %v597_v3  ;;  %v1632_v11 = vadd.f32 %v684_v60, %v681_v4  ;;  %v1634_v12 = vadd.f32 %v777_v62, %v774_v6  ;;  %2706 = sst [smem:[#allocation32_spill]] %s1653_s28  ;;  %v472_v19 = vstv %s1643_s16 }
  0x70   : > { %231 = vrot.lane.b32.xlu1 %v1520_v21, %s1351_s29  ;;  %v1611_v61 = vadd.f32 %v871_v55, %v868_v52  ;;  %v1636_v13 = vadd.f32 %v870_v63, %v867_v7  ;;  %2707 = sst [smem:[#allocation33_spill]] %s1655_s3  ;;  %s1683_s10 = sld [smem:[#allocation6 + $0x39]]  ;;  %v742_v22 = vstv %s1649_s27  ;;  %v835_v23 = vstv %s1651_s30 }
  0x71   : > { %2695 = vst [vmem:[#allocation21_spill] sm:$0xff] %v1630_v10  ;;  %2696 = vst [vmem:[#allocation22_spill] sm:$0xff] %v1632_v11  ;;  %2708 = sst [smem:[#allocation34_spill]] %s1657_s4  ;;  %s1681_s11 = sld [smem:[#allocation6 + $0x32]]  ;;  %v282_v24 = vstv %s1653_s28  ;;  %v375_v25 = vstv %s1655_s3  ;;  %v468_v26 = vstv %s1657_s4  ;;  %v561_v27 = vstv %s1659_s5 }
  0x72   : > { %2697 = vst [vmem:[#allocation23_spill] sm:$0xff] %v1634_v12  ;;  %2698 = vst [vmem:[#allocation24_spill] sm:$0xff] %v1636_v13  ;;  %2709 = sst [smem:[#allocation35_spill]] %s1659_s5  ;;  %s1685_s15 = sld [smem:[#allocation6 + $0x40]]  ;;  %v738_v29 = vstv %s1663_s8  ;;  %v831_v30 = vstv %s1665_s19  ;;  %v2665_v31 = vstv %s1667_s24  ;;  %v2661_v37 = vstv %s1675_s0 }
  0x73   : > { %229 = vrot.lane.b32.xlu0 %v1517_v20, %s1351_s29  ;;  %2711 = sst [smem:[#allocation37_spill]] %s1663_s8  ;;  %s1687_s12 = sld [smem:[#allocation6 + $0x47]]  ;;  %v2659_v38 = vstv %s1677_s1  ;;  %v1904_v63 = vadd.s32 8, %v1751_v16 }
  0x74   : > { %235 = vrot.lane.b32.xlu1 %v1515_v18, %s1351_s29  ;;  %2712 = sst [smem:[#allocation38_spill]] %s1665_s19  ;;  %s1689_s22 = sld [smem:[#allocation6 + $0x4e]]  ;;  %v2663_v34 = vstv %s1671_s20 }
  0x75   : > { %2713 = sst [smem:[#allocation39_spill]] %s1667_s24  ;;  %s1691_s9 = sld [smem:[#allocation6 + $0x55]]  ;;  %2830 = vst [vmem:[#allocation100_spill] sm:$0xff] %v1904_v63 }
  0x76   : > { %2715 = sst [smem:[#allocation41_spill]] %s1671_s20  ;;  %s1693_s2 = sld [smem:[#allocation6 + $0x5c]] }
  0x77   : > { %233 = vrot.lane.b32.xlu0 %v1512_v15, %s1351_s29  ;;  %s1639_s29 = sld [smem:[#allocation6 + $0x31]]  ;;  %2717 = sst [smem:[#allocation43_spill]] %s1675_s0 }
  0x78   : > { %244 = vrot.lane.b32.xlu1 %v1520_v21, %s1352_s6  ;;  %2718 = sst [smem:[#allocation44_spill]] %s1677_s1  ;;  %s1695_s21 = sld [smem:[#allocation6 + $0x2]] }
  0x79   : > { %2719 = sst [smem:[#allocation45_spill]] %s1679_s18  ;;  %s1697_s13 = sld [smem:[#allocation6 + $0x9]] }
  0x7a   : > { %2720 = sst [smem:[#allocation46_spill]] %s1681_s11  ;;  %s1699_s14 = sld [smem:[#allocation6 + $0x10]] }
  0x7b   : > { %242 = vrot.lane.b32.xlu0 %v1517_v20, %s1352_s6  ;;  %2721 = sst [smem:[#allocation47_spill]] %s1683_s10  ;;  %s1701_s18 = sld [smem:[#allocation6 + $0x17]] }
  0x7c   : > { %248 = vrot.lane.b32.xlu1 %v1515_v18, %s1352_s6  ;;  %2722 = sst [smem:[#allocation48_spill]] %s1685_s15  ;;  %s1703_s11 = sld [smem:[#allocation6 + $0x1e]] }
  0x7d   : > { %2699 = sst [smem:[#allocation25_spill]] %s1639_s29  ;;  %s1705_s10 = sld [smem:[#allocation6 + $0x25]]  ;;  %v286_v17 = vstv %s1639_s29 }
  0x7e   : > { %2723 = sst [smem:[#allocation49_spill]] %s1687_s12  ;;  %s1707_s15 = sld [smem:[#allocation6 + $0x2c]] }
  0x7f   : > { %246 = vrot.lane.b32.xlu0 %v1512_v15, %s1352_s6  ;;  %s1661_s6 = sld [smem:[#allocation6 + $0x1c]]  ;;  %2724 = sst [smem:[#allocation50_spill]] %s1689_s22 }
  0x80   : > { %257 = vrot.lane.b32.xlu1 %v1520_v21, %s1353_s25  ;;  %2725 = sst [smem:[#allocation51_spill]] %s1691_s9  ;;  %s1709_s12 = sld [smem:[#allocation6 + $0x33]] }
  0x81   : > { %2726 = sst [smem:[#allocation52_spill]] %s1693_s2  ;;  %s1711_s22 = sld [smem:[#allocation6 + $0x3a]] }
  0x82   : > { %2727 = sst [smem:[#allocation53_spill]] %s1695_s21  ;;  %s1713_s9 = sld [smem:[#allocation6 + $0x41]] }
  0x83   : > { %255 = vrot.lane.b32.xlu0 %v1517_v20, %s1353_s25  ;;  %2728 = sst [smem:[#allocation54_spill]] %s1697_s13  ;;  %s1715_s2 = sld [smem:[#allocation6 + $0x48]] }
  0x84   : > { %261 = vrot.lane.b32.xlu1 %v1515_v18, %s1353_s25  ;;  %2729 = sst [smem:[#allocation55_spill]] %s1699_s14  ;;  %s1717_s21 = sld [smem:[#allocation6 + $0x4f]] }
  0x85   : > { %2710 = sst [smem:[#allocation36_spill]] %s1661_s6  ;;  %s1719_s13 = sld [smem:[#allocation6 + $0x56]]  ;;  %v645_v28 = vstv %s1661_s6 }
  0x86   : > { %2730 = sst [smem:[#allocation56_spill]] %s1701_s18  ;;  %s1721_s14 = sld [smem:[#allocation6 + $0x5d]] }
  0x87   : > { %259 = vrot.lane.b32.xlu0 %v1512_v15, %s1353_s25  ;;  %s1669_s25 = sld [smem:[#allocation6 + $0x8]]  ;;  %2731 = sst [smem:[#allocation57_spill]] %s1703_s11 }
  0x88   : > { %270 = vrot.lane.b32.xlu1 %v1520_v21, %s1354_s23  ;;  %2732 = sst [smem:[#allocation58_spill]] %s1705_s10  ;;  %s1723_s18 = sld [smem:[#allocation6 + $0x4]]  ;;  %v649_v21 = vstv %s1647_s26 }
  0x89   : > { %2733 = sst [smem:[#allocation59_spill]] %s1707_s15  ;;  %s1725_s11 = sld [smem:[#allocation6 + $0xb]] }
  0x8a   : > { %2734 = sst [smem:[#allocation60_spill]] %s1709_s12  ;;  %s1727_s10 = sld [smem:[#allocation6 + $0x12]] }
  0x8b   : > { %268 = vrot.lane.b32.xlu0 %v1517_v20, %s1354_s23  ;;  %2735 = sst [smem:[#allocation61_spill]] %s1711_s22  ;;  %s1729_s12 = sld [smem:[#allocation6 + $0x19]]  ;;  %v565_v20 = vstv %s1645_s17 }
  0x8c   : > { %274 = vrot.lane.b32.xlu1 %v1515_v18, %s1354_s23  ;;  %2736 = sst [smem:[#allocation62_spill]] %s1713_s9  ;;  %s1731_s22 = sld [smem:[#allocation6 + $0x20]]  ;;  %v379_v18 = vstv %s1641_s7 }
  0x8d   : > { %2714 = sst [smem:[#allocation40_spill]] %s1669_s25  ;;  %s2757_s17 = sld [smem:[#allocation45_spill]]  ;;  %v2664_v33 = vstv %s1669_s25 }
  0x8e   : > { %2737 = sst [smem:[#allocation63_spill]] %s1715_s2  ;;  %s1771_s7 = sld [smem:[#allocation6 + $0x21]] }
  0x8f   : > { %272 = vrot.lane.b32.xlu0 %v1512_v15, %s1354_s23  ;;  %s1673_s23 = sld [smem:[#allocation6 + $0x16]]  ;;  %2738 = sst [smem:[#allocation64_spill]] %s1717_s21  ;;  %v1749_v15 = vand.u32 127, %v176_v14 }
  0x90   : > { %2739 = sst [smem:[#allocation65_spill]] %s1719_s13  ;;  %s1733_s21 = sld [smem:[#allocation6 + $0x27]] }
  0x91   : > { %2740 = sst [smem:[#allocation66_spill]] %s1721_s14  ;;  %s1735_s13 = sld [smem:[#allocation6 + $0x2e]]  ;;  %vm211_vm0 = vcmp.ge.s32.totalorder %v1749_v15, 3  ;;  %vm224_vm1 = vcmp.ge.s32.totalorder %v1749_v15, 2  ;;  %vm237_vm2 = vcmp.ge.s32.totalorder %v1749_v15, 1  ;;  %vm250_vm3 = vcmp.le.s32.totalorder %v1749_v15, 14 }
  0x92   : > { %2741 = sst [smem:[#allocation67_spill]] %s1723_s18  ;;  %s1737_s14 = sld [smem:[#allocation6 + $0x35]]  ;;  %vm263_vm4 = vcmp.le.s32.totalorder %v1749_v15, 13  ;;  %vm276_vm5 = vcmp.le.s32.totalorder %v1749_v15, 12 }
  0x93   : > { %2742 = sst [smem:[#allocation68_spill]] %s1725_s11  ;;  %s1739_s18 = sld [smem:[#allocation6 + $0x3c]]  ;;  %v2660_v39 = vstv %s2757_s17 }
  0x94   : > { %2743 = sst [smem:[#allocation69_spill]] %s1727_s10  ;;  %s1741_s10 = sld [smem:[#allocation6 + $0x43]] }
  0x95   : > { %2716 = sst [smem:[#allocation42_spill]] %s1673_s23  ;;  %s1747_s11 = sld [smem:[#allocation6 + $0x58]]  ;;  %v2662_v35 = vstv %s1673_s23 }
  0x96   : > { %2744 = sst [smem:[#allocation70_spill]] %s1729_s12  ;;  %s1743_s12 = sld [smem:[#allocation6 + $0x4a]] }
  0x97   : > { %2745 = sst [smem:[#allocation71_spill]] %s1731_s22  ;;  %s1745_s22 = sld [smem:[#allocation6 + $0x51]] }
  0x98   : > { %2746 = sst [smem:[#allocation72_spill]] %s1733_s21  ;;  %s2758_s16 = sld [smem:[#allocation46_spill]] }
  0x99   : > { %2747 = sst [smem:[#allocation73_spill]] %s1735_s13  ;;  %s1777_s29 = sld [smem:[#allocation6 + $0x28]] }
  0x9a   : > { %2748 = sst [smem:[#allocation74_spill]] %s1737_s14  ;;  %s1753_s14 = sld [smem:[#allocation6 + $0x5f]] }
  0x9b   : > { %2749 = sst [smem:[#allocation75_spill]] %s1739_s18  ;;  %s1755_s18 = sld [smem:[#allocation6 + $0x5]] }
  0x9c   : > { %2751 = sst [smem:[#allocation77_spill]] %s1747_s11  ;;  %s1763_s11 = sld [smem:[#allocation6 + $0x13]] }
  0x9d   : > { %2750 = sst [smem:[#allocation76_spill]] %s1745_s22  ;;  %s1761_s22 = sld [smem:[#allocation6 + $0xc]] }
  0x9e   : > { %2756 = sst [smem:[#allocation82_spill]] %s1771_s7  ;;  %s1779_s27 = sld [smem:[#allocation6 + $0x2f]]  ;;  %v2667_v41 = vstv %s2758_s16 }
  0x9f   : > { %2759 = sst [smem:[#allocation83_spill]] %s1777_s29  ;;  %s1785_s7 = sld [smem:[#allocation6 + $0x36]] }
  0xa0   : > { %2753 = sst [smem:[#allocation79_spill]] %s1753_s14  ;;  %s1787_s4 = sld [smem:[#allocation6 + $0x3d]] }
  0xa1   : > { %2754 = sst [smem:[#allocation80_spill]] %s1755_s18  ;;  %s1769_s18 = sld [smem:[#allocation6 + $0x1a]] }
  0xa2   : > { %s1793_s29 = sld [smem:[#allocation6 + $0x44]]  ;;  %s1795_s8 = sld [smem:[#allocation6 + $0x4b]] }
  0xa3   : > { %s1803_s20 = sld [smem:[#allocation6 + $0x59]]  ;;  %s1809_s23 = sld [smem:[#allocation6 + $0x60]] }
  0xa4   : > { %2761 = sst [smem:[#allocation84_spill]] %s1779_s27  ;;  %s1811_s17 = sld [smem:[#allocation6 + $0x6]] }
  0xa5   : > { %2765 = sst [smem:[#allocation85_spill]] %s1785_s7  ;;  %s1801_s7 = sld [smem:[#allocation6 + $0x52]] }
  0xa6   : > { %2767 = sst [smem:[#allocation86_spill]] %s1787_s4  ;;  %s1818_s16 = sld [smem:[#allocation6 + $0xd]] }
  0xa7   : > { %2755 = sst [smem:[#allocation81_spill]] %s1769_s18  ;;  %s1820_s5 = sld [smem:[#allocation6 + $0x14]] }
  0xa8   : > { %2770 = sst [smem:[#allocation87_spill]] %s1793_s29  ;;  %s1828_s27 = sld [smem:[#allocation6 + $0x22]] }
  0xa9   : > { %2772 = sst [smem:[#allocation88_spill]] %s1795_s8  ;;  %s1834_s24 = sld [smem:[#allocation6 + $0x29]] }
  0xaa   : > { %2778 = sst [smem:[#allocation90_spill]] %s1803_s20  ;;  %s1826_s20 = sld [smem:[#allocation6 + $0x1b]] }
  0xab   : > { %2776 = sst [smem:[#allocation89_spill]] %s1801_s7  ;;  %s1836_s4 = sld [smem:[#allocation6 + $0x30]] }
  0xac   : > { %2781 = sst [smem:[#allocation91_spill]] %s1809_s23  ;;  %s2799_s15 = sld [smem:[#allocation76_spill]] }
  0xad   : > { %2782 = sst [smem:[#allocation92_spill]] %s1811_s17  ;;  %s1842_s1 = sld [smem:[#allocation6 + $0x37]] }
  0xae   : > { %2786 = sst [smem:[#allocation93_spill]] %s1818_s16  ;;  %s1844_s9 = sld [smem:[#allocation6 + $0x3e]] }
  0xaf   : > { %2788 = sst [smem:[#allocation94_spill]] %s1820_s5  ;;  %s2803_s30 = sld [smem:[#allocation80_spill]] }
  0xb0   : > { %2792 = sst [smem:[#allocation95_spill]] %s1826_s20  ;;  %s1850_s2 = sld [smem:[#allocation6 + $0x45]] }
  0xb1   : > { %2794 = sst [smem:[#allocation96_spill]] %s1828_s27  ;;  %s2805_s28 = sld [smem:[#allocation81_spill]] }
  0xb2   : > { %2796 = sst [smem:[#allocation97_spill]] %s1834_s24  ;;  %s1852_s3 = sld [smem:[#allocation6 + $0x4c]] }
  0xb3   : > { %2798 = sst [smem:[#allocation98_spill]] %s1836_s4  ;;  %s2808_s26 = sld [smem:[#allocation83_spill]] }
  0xb4   : > { %2800 = sst [smem:[#allocation76_spill]] %s1842_s1  ;;  %s2809_s1 = sld [smem:[#allocation84_spill]] }
  0xb5   : > { %2802 = sst [smem:[#allocation99_spill]] %s1844_s9  ;;  %s2810_s9 = sld [smem:[#allocation85_spill]] }
  0xb6   : > { %2804 = sst [smem:[#allocation80_spill]] %s1850_s2  ;;  %s1858_s17 = sld [smem:[#allocation6 + $0x53]] }
  0xb7   : > { %s1860_s6 = sld [smem:[#allocation6 + $0x5a]]  ;;  %s1866_s21 = sld [smem:[#allocation6 + $0x61]] }
  0xb8   : > { %2806 = sst [smem:[#allocation81_spill]] %s1852_s3  ;;  %s2817_s19 = sld [smem:[#allocation92_spill]] }
  0xb9   : > { %s2836_s18 = sld [smem:[#allocation40_spill]]  ;;  %s2837_s7 = sld [smem:[#allocation41_spill]] }
  0xba   : > { %s2838_s8 = sld [smem:[#allocation42_spill]]  ;;  %s2839_s23 = sld [smem:[#allocation43_spill]] }
  0xbb   : > { %s2840_s0 = sld [smem:[#allocation44_spill]]  ;;  %s2841_s4 = sld [smem:[#allocation45_spill]] }
  0xbc   : > { %2811 = sst [smem:[#allocation83_spill]] %s1858_s17  ;;  %s2842_s13 = sld [smem:[#allocation46_spill]] }
  0xbd   : > { %2813 = sst [smem:[#allocation84_spill]] %s1860_s6  ;;  %s2843_s29 = sld [smem:[#allocation47_spill]] }
  0xbe   : > { %2815 = sst [smem:[#allocation85_spill]] %s1866_s21  ;;  %s2835_s21 = sld [smem:[#allocation39_spill]] }
  0xbf   : > { %s2844_s25 = sld [smem:[#allocation48_spill]]  ;;  %s2845_s24 = sld [smem:[#allocation49_spill]] }
  0xc0   : > { %s2846_s16 = sld [smem:[#allocation50_spill]]  ;;  %s2847_s5 = sld [smem:[#allocation51_spill]] }
  0xc1   : > { %s2848_s14 = sld [smem:[#allocation52_spill]]  ;;  %s2855_s2 = sld [smem:[#allocation53_spill]] }
  0xc2   : > { %s2862_s17 = sld [smem:[#allocation55_spill]]  ;;  %s2864_s27 = sld [smem:[#allocation56_spill]] }
  0xc3   : > { %s2867_s3 = sld [smem:[#allocation57_spill]]  ;;  %s2868_s6 = sld [smem:[#allocation58_spill]] }
  0xc4   : > { %s2871_s20 = sld [smem:[#allocation60_spill]] }
  0xd2   : > { %v208_v3 = vpop.permute.xlu1 %207 }
  0xd3   : > { %v214_v6 = vsel %vm211_vm0, %v208_v3, 0.0 }
  0xd4   : > { %v287_v1 = vmul.f32 %v286_v17, %v214_v6  ;;  %v380_v7 = vmul.f32 %v379_v18, %v214_v6  ;;  %v473_v4 = vmul.f32 %v472_v19, %v214_v6  ;;  %v566_v3 = vmul.f32 %v565_v20, %v214_v6 }
  0xd5   : > { %v204_v60 = vpop.permute.xlu0 %203  ;;  %v743_v2 = vmul.f32 %v742_v22, %v214_v6  ;;  %v836_v59 = vmul.f32 %v835_v23, %v214_v6 }
  0xd6   : > { %v210_v62 = vpop.permute.xlu1 %209  ;;  %v212_v0 = vsel %vm211_vm0, %v204_v60, 0.0  ;;  %v650_v60 = vmul.f32 %v649_v21, %v214_v6 }
  0xd7   : > { %v215_v14 = vsel %vm211_vm0, %v210_v62, 0.0  ;;  %v283_v57 = vmul.f32 %v282_v24, %v212_v0  ;;  %v376_v55 = vmul.f32 %v375_v25, %v212_v0  ;;  %v469_v62 = vmul.f32 %v468_v26, %v212_v0 }
  0xd8   : > { %v288_v58 = vmul.f32 %v286_v17, %v215_v14  ;;  %v381_v56 = vmul.f32 %v379_v18, %v215_v14  ;;  %v474_v52 = vmul.f32 %v472_v19, %v215_v14  ;;  %v567_v51 = vmul.f32 %v565_v20, %v215_v14 }
  0xd9   : > { %v206_v53 = vpop.permute.xlu0 %205  ;;  %v562_v6 = vmul.f32 %v561_v27, %v212_v0  ;;  %v646_v50 = vmul.f32 %v645_v28, %v212_v0  ;;  %v739_v17 = vmul.f32 %v738_v29, %v212_v0  ;;  %v832_v18 = vmul.f32 %v831_v30, %v212_v0 }
  0xda   : > { %v219_v49 = vpop.permute.xlu1 %218  ;;  %v213_v19 = vsel %vm211_vm0, %v206_v53, 0.0  ;;  %v651_v20 = vmul.f32 %v649_v21, %v215_v14  ;;  %v744_v47 = vmul.f32 %v742_v22, %v215_v14  ;;  %v837_v45 = vmul.f32 %v835_v23, %v215_v14 }
  0xdb   : > { %v226_v48 = vsel %vm224_vm1, %v219_v49, 0.0  ;;  %v1952_v43 = vadd.f32 %v287_v1, %v283_v57  ;;  %v1954_v0 = vadd.f32 %v380_v7, %v376_v55  ;;  %v1956_v49 = vadd.f32 %v473_v4, %v469_v62 }
  0xdc   : > { %v1958_v42 = vadd.f32 %v566_v3, %v562_v6  ;;  %v1960_v53 = vadd.f32 %v650_v60, %v646_v50  ;;  %v1962_v21 = vadd.f32 %v743_v2, %v739_v17  ;;  %v295_v22 = vmul.f32 %v2665_v31, %v226_v48 }
  0xdd   : > { %v388_v23 = vmul.f32 %v2664_v33, %v226_v48  ;;  %v284_v57 = vmul.f32 %v282_v24, %v213_v19  ;;  %v1971_v1 = vadd.f32 %v836_v59, %v832_v18  ;;  %v481_v50 = vmul.f32 %v2663_v34, %v226_v48  ;;  %v217_v17 = vpop.permute.xlu0 %216 }
  0xde   : > { %v223_v55 = vpop.permute.xlu1 %222  ;;  %v574_v2 = vmul.f32 %v2662_v35, %v226_v48  ;;  %v658_v4 = vmul.f32 %v2661_v37, %v226_v48  ;;  %v751_v24 = vmul.f32 %v2659_v38, %v226_v48  ;;  %v844_v7 = vmul.f32 %v2660_v39, %v226_v48 }
  0xdf   : > { %v377_v14 = vmul.f32 %v375_v25, %v213_v19  ;;  %v228_v59 = vsel %vm224_vm1, %v223_v55, 0.0  ;;  %v290_v3 = vadd.f32 %v288_v58, %v284_v57  ;;  %v470_v60 = vmul.f32 %v468_v26, %v213_v19 }
  0xe0   : > { %v563_v62 = vmul.f32 %v561_v27, %v213_v19  ;;  %v647_v6 = vmul.f32 %v645_v28, %v213_v19  ;;  %v740_v18 = vmul.f32 %v738_v29, %v213_v19  ;;  %v833_v38 = vmul.f32 %v831_v30, %v213_v19 }
  0xe1   : > { %v298_v48 = vmul.f32 %v2667_v41, %v228_v59  ;;  %v2849_v39 = vstv %s2843_s29  ;;  %v2850_v37 = vstv %s2844_s25  ;;  %v2851_v55 = vstv %s2845_s24 }
  0xe2   : > { %v391_v25 = vmul.f32 %v2849_v39, %v228_v59  ;;  %v484_v35 = vmul.f32 %v2850_v37, %v228_v59  ;;  %v577_v34 = vmul.f32 %v2851_v55, %v228_v59  ;;  %v2852_v58 = vstv %s2846_s16  ;;  %v232_v30 = vpop.permute.xlu1 %231 }
  0xe3   : > { %v661_v57 = vmul.f32 %v2852_v58, %v228_v59  ;;  %v2853_v26 = vstv %s2847_s5  ;;  %v300_v27 = vadd.f32 %v298_v48, %v295_v22  ;;  %v2854_v28 = vstv %s2848_s14 }
  0xe4   : > { %v754_v33 = vmul.f32 %v2853_v26, %v228_v59  ;;  %v393_v31 = vadd.f32 %v391_v25, %v388_v23  ;;  %v847_v63 = vmul.f32 %v2854_v28, %v228_v59  ;;  %v225_v29 = vsel %vm224_vm1, %v217_v17, 0.0 }
  0xe5   : > { %v486_v19 = vadd.f32 %v484_v35, %v481_v50  ;;  %v579_v41 = vadd.f32 %v577_v34, %v574_v2  ;;  %v663_v39 = vadd.f32 %v661_v57, %v658_v4  ;;  %v383_v37 = vadd.f32 %v381_v56, %v377_v14 }
  0xe6   : > { %v756_v16 = vadd.f32 %v754_v33, %v751_v24  ;;  %v476_v13 = vadd.f32 %v474_v52, %v470_v60  ;;  %v569_v55 = vadd.f32 %v567_v51, %v563_v62  ;;  %v849_v58 = vadd.f32 %v847_v63, %v844_v7  ;;  %v221_v52 = vpop.permute.xlu0 %220 }
  0xe7   : > { %v653_v22 = vadd.f32 %v651_v20, %v647_v6  ;;  %v746_v23 = vadd.f32 %v744_v47, %v740_v18  ;;  %v839_v59 = vadd.f32 %v837_v45, %v833_v38  ;;  %v2013_v48 = vadd.f32 %v300_v27, %v290_v3 }
  0xe8   : > { %v2015_v17 = vadd.f32 %v393_v31, %v383_v37  ;;  %v2017_v34 = vadd.f32 %v486_v19, %v476_v13  ;;  %v2019_v33 = vadd.f32 %v579_v41, %v569_v55  ;;  %v2856_v35 = vstv %s2835_s21  ;;  %s2861_s21 = sld [smem:[#allocation54_spill]] }
  0xe9   : > { %v294_v51 = vmul.f32 %v2856_v35, %v225_v29  ;;  %v2023_v56 = vadd.f32 %v663_v39, %v653_v22  ;;  %v2025_v38 = vadd.f32 %v756_v16, %v746_v23  ;;  %v2027_v45 = vadd.f32 %v849_v58, %v839_v59  ;;  %v236_v16 = vpop.permute.xlu1 %235 }
  0xea   : > { %v239_v13 = vsel %vm237_vm2, %v232_v30, 0.0  ;;  %v2857_v31 = vstv %s2836_s18  ;;  %v2858_v47 = vstv %s2837_s7  ;;  %v2859_v20 = vstv %s2838_s8  ;;  %s2873_s18 = sld [smem:[#allocation59_spill]]  ;;  %s2890_s7 = sld [smem:[#allocation66_spill]] }
  0xeb   : > { %v387_v41 = vmul.f32 %v2857_v31, %v225_v29  ;;  %v480_v63 = vmul.f32 %v2858_v47, %v225_v29  ;;  %v573_v50 = vmul.f32 %v2859_v20, %v225_v29  ;;  %v2860_v2 = vstv %s2839_s23  ;;  %s2897_s8 = sld [smem:[#allocation67_spill]]  ;;  %s2900_s23 = sld [smem:[#allocation68_spill]] }
  0xec   : > { %v657_v4 = vmul.f32 %v2860_v2, %v225_v29  ;;  %v2863_v24 = vstv %s2840_s0  ;;  %v2865_v14 = vstv %s2841_s4  ;;  %v2866_v60 = vstv %s2855_s2  ;;  %s2881_s0 = sld [smem:[#allocation61_spill]]  ;;  %s2882_s4 = sld [smem:[#allocation62_spill]] }
  0xed   : > { %v750_v7 = vmul.f32 %v2863_v24, %v225_v29  ;;  %v843_v3 = vmul.f32 %v2865_v14, %v225_v29  ;;  %v307_v62 = vmul.f32 %v2866_v60, %v239_v13  ;;  %v227_v6 = vsel %vm224_vm1, %v221_v52, 0.0 }
  0xee   : > { %v2869_v18 = vstv %s2842_s13  ;;  %v2870_v57 = vstv %s2843_s29  ;;  %v2872_v27 = vstv %s2844_s25  ;;  %v2874_v30 = vstv %s2845_s24  ;;  %s2884_s24 = sld [smem:[#allocation63_spill]]  ;;  %s2907_s13 = sld [smem:[#allocation69_spill]] }
  0xef   : > { %v297_v25 = vmul.f32 %v2869_v18, %v227_v6  ;;  %v390_v26 = vmul.f32 %v2870_v57, %v227_v6  ;;  %v483_v28 = vmul.f32 %v2872_v27, %v227_v6  ;;  %v576_v19 = vmul.f32 %v2874_v30, %v227_v6  ;;  %s2910_s29 = sld [smem:[#allocation70_spill]]  ;;  %s2912_s25 = sld [smem:[#allocation71_spill]] }
  0xf0   : > { %v2875_v39 = vstv %s2846_s16  ;;  %v2876_v29 = vstv %s2847_s5  ;;  %v2877_v58 = vstv %s2848_s14  ;;  %v241_v23 = vsel %vm237_vm2, %v236_v16, 0.0  ;;  %s2886_s14 = sld [smem:[#allocation64_spill]]  ;;  %s2888_s5 = sld [smem:[#allocation65_spill]] }
  0xf1   : > { %v660_v37 = vmul.f32 %v2875_v39, %v227_v6  ;;  %v753_v55 = vmul.f32 %v2876_v29, %v227_v6  ;;  %v846_v22 = vmul.f32 %v2877_v58, %v227_v6  ;;  %v2878_v59 = vstv %s2861_s21  ;;  %s2914_s16 = sld [smem:[#allocation72_spill]] }
  0xf2   : > { %v400_v35 = vmul.f32 %v2878_v59, %v239_v13  ;;  %v2879_v52 = vstv %s2862_s17  ;;  %v2880_v47 = vstv %s2864_s27  ;;  %v299_v2 = vadd.f32 %v297_v25, %v294_v51  ;;  %v230_v59 = vpop.permute.xlu0 %229 }
  0xf3   : > { %v493_v31 = vmul.f32 %v2879_v52, %v239_v13  ;;  %v586_v20 = vmul.f32 %v2880_v47, %v239_v13  ;;  %v2883_v24 = vstv %s2867_s3  ;;  %v2885_v60 = vstv %s2868_s6 }
  0xf4   : > { %v670_v14 = vmul.f32 %v2883_v24, %v239_v13  ;;  %v763_v6 = vmul.f32 %v2885_v60, %v239_v13  ;;  %v392_v18 = vadd.f32 %v390_v26, %v387_v41  ;;  %v2887_v57 = vstv %s2871_s20 }
  0xf5   : > { %v310_v16 = vmul.f32 %v2887_v57, %v241_v23  ;;  %v2889_v27 = vstv %s2873_s18  ;;  %v485_v39 = vadd.f32 %v483_v28, %v480_v63  ;;  %v578_v29 = vadd.f32 %v576_v19, %v573_v50 }
  0xf6   : > { %v856_v30 = vmul.f32 %v2889_v27, %v239_v13  ;;  %v662_v58 = vadd.f32 %v660_v37, %v657_v4  ;;  %v2079_v52 = vadd.f32 %v299_v2, %v1952_v43  ;;  %v755_v51 = vadd.f32 %v753_v55, %v750_v7  ;;  %v245_v37 = vpop.permute.xlu1 %244 }
  0xf7   : > { %v848_v25 = vadd.f32 %v846_v22, %v843_v3  ;;  %v312_v47 = vadd.f32 %v310_v16, %v307_v62  ;;  %v2891_v24 = vstv %s2881_s0  ;;  %v2892_v60 = vstv %s2882_s4  ;;  %s2966_s0 = sld [smem:[#allocation91_spill]] }
  0xf8   : > { %v403_v12 = vmul.f32 %v2891_v24, %v241_v23  ;;  %v496_v41 = vmul.f32 %v2892_v60, %v241_v23  ;;  %v2893_v26 = vstv %s2884_s24  ;;  %v2894_v57 = vstv %s2886_s14 }
  0xf9   : > { %v589_v11 = vmul.f32 %v2893_v26, %v241_v23  ;;  %v673_v10 = vmul.f32 %v2894_v57, %v241_v23  ;;  %v394_v13 = vadd.f32 %v392_v18, %v1954_v0  ;;  %v2895_v63 = vstv %s2888_s5 }
  0xfa   : > { %v766_v50 = vmul.f32 %v2895_v63, %v241_v23  ;;  %v2896_v4 = vstv %s2890_s7  ;;  %v238_v43 = vsel %vm237_vm2, %v230_v59, 0.0  ;;  %v405_v7 = vadd.f32 %v403_v12, %v400_v35 }
  0xfb   : > { %v859_v28 = vmul.f32 %v2896_v4, %v241_v23  ;;  %v498_v3 = vadd.f32 %v496_v41, %v493_v31  ;;  %v591_v62 = vadd.f32 %v589_v11, %v586_v20  ;;  %v675_v19 = vadd.f32 %v673_v10, %v670_v14 }
  0xfc   : > { %v487_v55 = vadd.f32 %v485_v39, %v1956_v49  ;;  %v580_v22 = vadd.f32 %v578_v29, %v1958_v42  ;;  %v768_v2 = vadd.f32 %v766_v50, %v763_v6  ;;  %v664_v23 = vadd.f32 %v662_v58, %v1960_v53  ;;  %v234_v53 = vpop.permute.xlu0 %233 }
  0xfd   : > { %v861_v0 = vadd.f32 %v859_v28, %v856_v30  ;;  %v757_v18 = vadd.f32 %v755_v51, %v1962_v21  ;;  %v850_v12 = vadd.f32 %v848_v25, %v1971_v1  ;;  %v314_v10 = vadd.f32 %v312_v47, %v2013_v48  ;;  %v249_v25 = vpop.permute.xlu1 %248 }
  0xfe   : > { %v407_v11 = vadd.f32 %v405_v7, %v2015_v17  ;;  %v500_v42 = vadd.f32 %v498_v3, %v2017_v34  ;;  %v2898_v49 = vstv %s2855_s2  ;;  %v2899_v31 = vstv %s2861_s21  ;;  %s2917_s2 = sld [smem:[#allocation73_spill]]  ;;  %s2919_s21 = sld [smem:[#allocation74_spill]] }
  0xff   : > { %v306_v35 = vmul.f32 %v2898_v49, %v238_v43  ;;  %v399_v20 = vmul.f32 %v2899_v31, %v238_v43  ;;  %v593_v21 = vadd.f32 %v591_v62, %v2019_v33  ;;  %v677_v1 = vadd.f32 %v675_v19, %v2023_v56 }
 0x100   : > { %v770_v48 = vadd.f32 %v768_v2, %v2025_v38  ;;  %v252_v17 = vsel %vm250_vm3, %v245_v37, 0.0  ;;  %v863_v34 = vadd.f32 %v861_v0, %v2027_v45  ;;  %v2901_v14 = vstv %s2862_s17  ;;  %s2920_s17 = sld [smem:[#allocation75_spill]] }
 0x101   : > { %v492_v6 = vmul.f32 %v2901_v14, %v238_v43  ;;  %v2902_v16 = vstv %s2864_s27  ;;  %v2903_v30 = vstv %s2867_s3  ;;  %v2904_v39 = vstv %s2868_s6  ;;  %s2927_s27 = sld [smem:[#allocation77_spill]]  ;;  %s2930_s3 = sld [smem:[#allocation79_spill]] }
 0x102   : > { %v585_v27 = vmul.f32 %v2902_v16, %v238_v43  ;;  %v669_v33 = vmul.f32 %v2903_v30, %v238_v43  ;;  %v762_v29 = vmul.f32 %v2904_v39, %v238_v43  ;;  %v2905_v56 = vstv %s2873_s18  ;;  %s2937_s6 = sld [smem:[#allocation82_spill]] }
 0x103   : > { %v855_v58 = vmul.f32 %v2905_v56, %v238_v43  ;;  %v2906_v59 = vstv %s2897_s8  ;;  %v240_v51 = vsel %vm237_vm2, %v234_v53, 0.0  ;;  %v2908_v47 = vstv %s2871_s20  ;;  %s2956_s20 = sld [smem:[#allocation86_spill]]  ;;  %s2965_s18 = sld [smem:[#allocation90_spill]] }
 0x104   : > { %v331_v38 = vmul.f32 %v2906_v59, %v252_v17  ;;  %v309_v45 = vmul.f32 %v2908_v47, %v240_v51  ;;  %v402_v60 = vmul.f32 %v2891_v24, %v240_v51  ;;  %v2909_v41 = vstv %s2882_s4  ;;  %s2977_s4 = sld [smem:[#allocation76_spill]] }
 0x105   : > { %v495_v26 = vmul.f32 %v2909_v41, %v240_v51  ;;  %v2911_v57 = vstv %s2884_s24  ;;  %v2913_v50 = vstv %s2900_s23  ;;  %v2915_v28 = vstv %s2886_s14  ;;  %s2984_s24 = sld [smem:[#allocation96_spill]]  ;;  %s2986_s14 = sld [smem:[#allocation97_spill]] }
 0x106   : > { %v588_v63 = vmul.f32 %v2911_v57, %v240_v51  ;;  %v424_v4 = vmul.f32 %v2913_v50, %v252_v17  ;;  %v672_v43 = vmul.f32 %v2915_v28, %v240_v51  ;;  %v2916_v7 = vstv %s2888_s5  ;;  %s2988_s5 = sld [smem:[#allocation98_spill]] }
 0x107   : > { %v765_v3 = vmul.f32 %v2916_v7, %v240_v51  ;;  %v2918_v62 = vstv %s2890_s7  ;;  %v311_v37 = vadd.f32 %v309_v45, %v306_v35  ;;  %v404_v2 = vadd.f32 %v402_v60, %v399_v20  ;;  %v243_v7 = vpop.permute.xlu0 %242  ;;  %s3007_s7 = sld [smem:[#allocation84_spill]] }
 0x108   : > { %v858_v19 = vmul.f32 %v2918_v62, %v240_v51  ;;  %v497_v0 = vadd.f32 %v495_v26, %v492_v6  ;;  %v254_v49 = vsel %vm250_vm3, %v249_v25, 0.0  ;;  %v2921_v31 = vstv %s2907_s13 }
 0x109   : > { %v517_v53 = vmul.f32 %v2921_v31, %v252_v17  ;;  %v590_v14 = vadd.f32 %v588_v63, %v585_v27  ;;  %v674_v16 = vadd.f32 %v672_v43, %v669_v33  ;;  %v767_v30 = vadd.f32 %v765_v3, %v762_v29 }
 0x10a   : > { %v2922_v39 = vstv %s2910_s29  ;;  %v2923_v59 = vstv %s2912_s25  ;;  %v2924_v51 = vstv %s2914_s16  ;;  %v860_v6 = vadd.f32 %v858_v19, %v855_v58 }
 0x10b   : > { %v610_v56 = vmul.f32 %v2922_v39, %v252_v17  ;;  %v694_v35 = vmul.f32 %v2923_v59, %v252_v17  ;;  %v787_v20 = vmul.f32 %v2924_v51, %v252_v17  ;;  %v2925_v47 = vstv %s2917_s2 }
 0x10c   : > { %v880_v45 = vmul.f32 %v2925_v47, %v252_v17  ;;  %v313_v25 = vadd.f32 %v311_v37, %v2079_v52  ;;  %v326_v24 = vadd.f32 %v1565_v32, %v314_v10  ;;  %v2926_v60 = vstv %s2919_s21 }
 0x10d   : > { %v334_v41 = vmul.f32 %v2926_v60, %v254_v49  ;;  %v406_v27 = vadd.f32 %v404_v2, %v394_v13  ;;  %v499_v33 = vadd.f32 %v497_v0, %v487_v55  ;;  %v2928_v29 = vstv %s2920_s17 }
 0x10e   : > { %v427_v26 = vmul.f32 %v2928_v29, %v254_v49  ;;  %v2929_v57 = vstv %s1741_s10  ;;  %v592_v50 = vadd.f32 %v590_v14, %v580_v22  ;;  %v676_v28 = vadd.f32 %v674_v16, %v664_v23 }
 0x10f   : > { %v520_v63 = vmul.f32 %v2929_v57, %v254_v49  ;;  %v769_v58 = vadd.f32 %v767_v30, %v757_v18  ;;  %v2931_v43 = vstv %s1743_s12  ;;  %v862_v3 = vadd.f32 %v860_v6, %v850_v12 }
 0x110   : > { %v613_v17 = vmul.f32 %v2931_v43, %v254_v49  ;;  %v336_v52 = vadd.f32 %v334_v41, %v331_v38  ;;  %v429_v62 = vadd.f32 %v427_v26, %v424_v4  ;;  %v2932_v32 = vstv %s2799_s15 }
 0x111   : > { %v697_v10 = vmul.f32 %v2932_v32, %v254_v49  ;;  %v419_v13 = vadd.f32 %v1570_v36, %v407_v11  ;;  %v522_v19 = vadd.f32 %v520_v63, %v517_v53  ;;  %v2933_v37 = vstv %s2927_s27  ;;  %v258_v11 = vpop.permute.xlu1 %257 }
 0x112   : > { %v615_v55 = vadd.f32 %v613_v17, %v610_v56  ;;  %v790_v2 = vmul.f32 %v2933_v37, %v254_v49  ;;  %v512_v0 = vadd.f32 %v1575_v40, %v500_v42  ;;  %v605_v22 = vadd.f32 %v1588_v44, %v593_v21 }
 0x113   : > { %v699_v23 = vadd.f32 %v697_v10, %v694_v35  ;;  %v2934_v18 = vstv %s2930_s3  ;;  %v689_v12 = vadd.f32 %v1591_v46, %v677_v1  ;;  %v782_v38 = vadd.f32 %v1602_v54, %v770_v48 }
 0x114   : > { %v883_v31 = vmul.f32 %v2934_v18, %v254_v49  ;;  %v792_v4 = vadd.f32 %v790_v2, %v787_v20  ;;  %v251_v36 = vsel %vm250_vm3, %v243_v7, 0.0  ;;  %v2180_v40 = vadd.f32 %v336_v52, %v326_v24  ;;  %v247_v49 = vpop.permute.xlu0 %246 }
 0x115   : > { %v2182_v44 = vadd.f32 %v429_v62, %v419_v13  ;;  %v875_v42 = vadd.f32 %v1611_v61, %v863_v34  ;;  %v2185_v54 = vadd.f32 %v522_v19, %v512_v0  ;;  %v2187_v21 = vadd.f32 %v615_v55, %v605_v22  ;;  %v262_v13 = vpop.permute.xlu1 %261 }
 0x116   : > { %v885_v46 = vadd.f32 %v883_v31, %v880_v45  ;;  %v2189_v1 = vadd.f32 %v699_v23, %v689_v12  ;;  %v265_v48 = vsel %vm263_vm4, %v258_v11, 0.0  ;;  %v2193_v53 = vadd.f32 %v792_v4, %v782_v38 }
 0x117   : > { %v2935_v61 = vstv %s2897_s8  ;;  %v2936_v14 = vstv %s2900_s23  ;;  %v2938_v30 = vstv %s2907_s13  ;;  %v2939_v59 = vstv %s2910_s29  ;;  %s3008_s8 = sld [smem:[#allocation85_spill]]  ;;  %s3032_s23 = sld [smem:[#allocation15_spill]] }
 0x118   : > { %v330_v34 = vmul.f32 %v2935_v61, %v251_v36  ;;  %v423_v16 = vmul.f32 %v2936_v14, %v251_v36  ;;  %v516_v39 = vmul.f32 %v2938_v30, %v251_v36  ;;  %v2201_v56 = vadd.f32 %v885_v46, %v875_v42  ;;  %s3033_s13 = sld [smem:[#allocation18_spill]] }
 0x119   : > { %v609_v35 = vmul.f32 %v2939_v59, %v251_v36  ;;  %v2940_v51 = vstv %s2912_s25  ;;  %v2941_v6 = vstv %s2914_s16  ;;  %v2942_v45 = vstv %s2917_s2 }
 0x11a   : > { %v693_v20 = vmul.f32 %v2940_v51, %v251_v36  ;;  %v786_v47 = vmul.f32 %v2941_v6, %v251_v36  ;;  %v879_v24 = vmul.f32 %v2942_v45, %v251_v36  ;;  %v2943_v60 = vstv %s2803_s30  ;;  %v256_v45 = vpop.permute.xlu0 %255 }
 0x11b   : > { %v343_v41 = vmul.f32 %v2943_v60, %v265_v48  ;;  %v2944_v29 = vstv %s1761_s22  ;;  %v253_v57 = vsel %vm250_vm3, %v247_v49, 0.0  ;;  %v2945_v63 = vstv %s1763_s11  ;;  %v2955_v49 = vld [vmem:[#allocation21_spill] sm:$0xff] }
 0x11c   : > { %v436_v26 = vmul.f32 %v2944_v29, %v265_v48  ;;  %v529_v43 = vmul.f32 %v2945_v63, %v265_v48  ;;  %v2946_v17 = vstv %s2805_s28  ;;  %v2947_v52 = vstv %s2919_s21 }
 0x11d   : > { %v622_v7 = vmul.f32 %v2946_v17, %v265_v48  ;;  %v333_v62 = vmul.f32 %v2947_v52, %v253_v57  ;;  %v2948_v32 = vstv %s2920_s17  ;;  %v2949_v19 = vstv %s2937_s6  ;;  %s1152_s25 = sshll.u32 %s3032_s23, 8 }
 0x11e   : > { %v426_v10 = vmul.f32 %v2948_v32, %v253_v57  ;;  %v706_v55 = vmul.f32 %v2949_v19, %v265_v48  ;;  %v2950_v37 = vstv %s2808_s26  ;;  %v2951_v0 = vstv %s1741_s10  ;;  %s2958_s10 = sld [smem:[#allocation87_spill]]  ;;  %p3035_p12 = scmp.ne.s32.totalorder %s3033_s13, 0 }
 0x11f   : > { %v799_v2 = vmul.f32 %v2950_v37, %v265_v48  ;;  %v519_v22 = vmul.f32 %v2951_v0, %v253_v57  ;;  %v2952_v23 = vstv %s1743_s12  ;;  %v2953_v31 = vstv %s2809_s1  ;;  %s2960_s12 = sld [smem:[#allocation88_spill]] }
 0x120   : > { %v612_v18 = vmul.f32 %v2952_v23, %v253_v57  ;;  %v892_v12 = vmul.f32 %v2953_v31, %v265_v48  ;;  %v325_v38 = vadd.f32 %v1621_v5, %v313_v25  ;;  %v335_v4 = vadd.f32 %v333_v62, %v330_v34  ;;  %v2959_v48 = vld [vmem:[#allocation22_spill] sm:$0xff]  ;;  %v2961_v25 = vld [vmem:[#allocation23_spill] sm:$0xff] }
 0x121   : > { %v2954_v36 = vstv %s2799_s15  ;;  %v418_v42 = vadd.f32 %v1626_v8, %v406_v27  ;;  %v511_v46 = vadd.f32 %v1628_v9, %v499_v33  ;;  %v604_v61 = vadd.f32 %v2955_v49, %v592_v50  ;;  %s2962_s15 = sld [smem:[#allocation89_spill]]  ;;  %v2964_v9 = vld [vmem:[#allocation24_spill] sm:$0xff] }
 0x122   : > { %v696_v11 = vmul.f32 %v2954_v36, %v253_v57  ;;  %v2957_v14 = vstv %s2927_s27  ;;  %v428_v59 = vadd.f32 %v426_v10, %v423_v16  ;;  %v688_v5 = vadd.f32 %v2959_v48, %v676_v28  ;;  %s3034_s27 = sld [smem:[#allocation103_spill]] }
 0x123   : > { %v789_v30 = vmul.f32 %v2957_v14, %v253_v57  ;;  %v781_v34 = vadd.f32 %v2961_v25, %v769_v58  ;;  %v2963_v51 = vstv %s2930_s3  ;;  %v521_v27 = vadd.f32 %v519_v22, %v516_v39  ;;  %v271_v58 = vpop.permute.xlu1 %270 }
 0x124   : > { %v882_v8 = vmul.f32 %v2963_v51, %v253_v57  ;;  %v614_v6 = vadd.f32 %v612_v18, %v609_v35  ;;  %v874_v33 = vadd.f32 %v2964_v9, %v862_v3  ;;  %v267_v50 = vsel %vm263_vm4, %v262_v13, 0.0 }
 0x125   : > { %v2251_v60 = vadd.f32 %v335_v4, %v325_v38  ;;  %v698_v16 = vadd.f32 %v696_v11, %v693_v20  ;;  %v2967_v29 = vstv %s2810_s9  ;;  %v2968_v63 = vstv %s2956_s20  ;;  %s3001_s9 = sld [smem:[#allocation80_spill]] }
 0x126   : > { %v346_v28 = vmul.f32 %v2967_v29, %v267_v50  ;;  %v439_v17 = vmul.f32 %v2968_v63, %v267_v50  ;;  %v791_v52 = vadd.f32 %v789_v30, %v786_v47  ;;  %v2969_v57 = vstv %s2958_s10  ;;  %s1355_s10 = smov [#allocation7]  }
 0x127   : > { %v532_v39 = vmul.f32 %v2969_v57, %v267_v50  ;;  %v2970_v35 = vstv %s2960_s12  ;;  %v2971_v32 = vstv %s2962_s15  ;;  %v884_v10 = vadd.f32 %v882_v8, %v879_v24  ;;  %s1277_s12 = sshll.u32 %s1355_s10, 4  ;;  %s1278_s12 = int_to_ptr.vmem [resolvable:$false] %s1277_s12 }
 0x128   : > { %v625_v62 = vmul.f32 %v2970_v35, %v267_v50  ;;  %v709_v3 = vmul.f32 %v2971_v32, %v267_v50  ;;  %v348_v19 = vadd.f32 %v346_v28, %v343_v41  ;;  %v441_v13 = vadd.f32 %v439_v17, %v436_v26  ;;  %s2474_s3 = scalar_lea.hbm %s3034_s27, %s1152_s25  ;;  %s1279_s15 = scalar_lea.vmem %s1278_s12, 512 }
 0x129   : > { %v2972_v37 = vstv %s2965_s18  ;;  %v534_v22 = vadd.f32 %v532_v39, %v529_v43  ;;  %v2973_v18 = vstv %s2966_s0  ;;  %v430_v38 = vadd.f32 %v428_v59, %v418_v42 }
 0x12a   : > { %v802_v0 = vmul.f32 %v2972_v37, %v267_v50  ;;  %v627_v23 = vadd.f32 %v625_v62, %v622_v7  ;;  %v711_v20 = vadd.f32 %v709_v3, %v706_v55  ;;  %v895_v31 = vmul.f32 %v2973_v18, %v267_v50  ;;  %v260_v7 = vpop.permute.xlu0 %259 }
 0x12b   : > { %v2267_v4 = vadd.f32 %v521_v27, %v511_v46  ;;  %v264_v36 = vsel %vm263_vm4, %v256_v45, 0.0  ;;  %v2271_v24 = vadd.f32 %v614_v6, %v604_v61  ;;  %v2273_v41 = vadd.f32 %v698_v16, %v688_v5  ;;  %v275_v46 = vpop.permute.xlu1 %274 }
 0x12c   : > { %v804_v47 = vadd.f32 %v802_v0, %v799_v2  ;;  %v2275_v26 = vadd.f32 %v791_v52, %v781_v34  ;;  %v897_v43 = vadd.f32 %v895_v31, %v892_v12  ;;  %v2277_v55 = vadd.f32 %v884_v10, %v874_v33 }
 0x12d   : > { %v350_v11 = vadd.f32 %v348_v19, %v2180_v40  ;;  %v443_v2 = vadd.f32 %v441_v13, %v2182_v44  ;;  %v2282_v42 = vadd.f32 %v534_v22, %v2185_v54  ;;  %v2285_v49 = vadd.f32 %v627_v23, %v2187_v21 }
 0x12e   : > { %v2288_v12 = vadd.f32 %v711_v20, %v2189_v1  ;;  %v2291_v40 = vadd.f32 %v804_v47, %v2193_v53  ;;  %v2974_v61 = vstv %s2803_s30  ;;  %v2975_v14 = vstv %s1761_s22  ;;  %s2979_s30 = sld [smem:[#allocation93_spill]]  ;;  %s2981_s22 = sld [smem:[#allocation94_spill]] }
 0x12f   : > { %v342_v44 = vmul.f32 %v2974_v61, %v264_v36  ;;  %v435_v54 = vmul.f32 %v2975_v14, %v264_v36  ;;  %v2976_v30 = vstv %s1763_s11  ;;  %v278_v21 = vsel %vm276_vm5, %v271_v58, 0.0  ;;  %s2982_s11 = sld [smem:[#allocation95_spill]] }
 0x130   : > { %v528_v59 = vmul.f32 %v2976_v30, %v264_v36  ;;  %v266_v1 = vsel %vm263_vm4, %v260_v7, 0.0  ;;  %v2304_v53 = vadd.f32 %v897_v43, %v2201_v56  ;;  %v2978_v48 = vstv %s2805_s28  ;;  %s3005_s28 = sld [smem:[#allocation83_spill]] }
 0x131   : > { %v621_v5 = vmul.f32 %v2978_v48, %v264_v36  ;;  %v2980_v25 = vstv %s2937_s6  ;;  %v280_v51 = vsel %vm276_vm5, %v275_v46, 0.0  ;;  %v2983_v8 = vstv %s2808_s26  ;;  %s3003_s26 = sld [smem:[#allocation81_spill]]  ;;  %v269_v48 = vpop.permute.xlu0 %268 }
 0x132   : > { %v705_v34 = vmul.f32 %v2980_v25, %v264_v36  ;;  %v798_v27 = vmul.f32 %v2983_v8, %v264_v36  ;;  %v2985_v6 = vstv %s2809_s1  ;;  %v2987_v33 = vstv %s2817_s19  ;;  %s2999_s1 = sld [smem:[#allocation99_spill]] }
 0x133   : > { %v891_v9 = vmul.f32 %v2985_v6, %v264_v36  ;;  %v355_v56 = vmul.f32 %v2987_v33, %v278_v21  ;;  %v2989_v50 = vmov %v2967_v29  ;;  %v2990_v16 = vmov %v2968_v63 }
 0x134   : > { %v345_v45 = vmul.f32 %v2989_v50, %v266_v1  ;;  %v438_v29 = vmul.f32 %v2990_v16, %v266_v1  ;;  %v2991_v28 = vmov %v2969_v57  ;;  %v2992_v17 = vmov %v2970_v35 }
 0x135   : > { %v531_v63 = vmul.f32 %v2991_v28, %v266_v1  ;;  %v624_v58 = vmul.f32 %v2992_v17, %v266_v1  ;;  %v2993_v52 = vmov %v2971_v32  ;;  %v2994_v35 = vmov %v2972_v37 }
 0x136   : > { %v708_v57 = vmul.f32 %v2993_v52, %v266_v1  ;;  %v347_v39 = vadd.f32 %v345_v45, %v342_v44  ;;  %v801_v62 = vmul.f32 %v2994_v35, %v266_v1  ;;  %v2995_v32 = vmov %v2973_v18 }
 0x137   : > { %v894_v3 = vmul.f32 %v2995_v32, %v266_v1  ;;  %v2996_v10 = vstv %s2977_s4  ;;  %v2997_v13 = vstv %s2979_s30  ;;  %v2998_v0 = vstv %s2981_s22 }
 0x138   : > { %v358_v19 = vmul.f32 %v2996_v10, %v280_v51  ;;  %v448_v37 = vmul.f32 %v2997_v13, %v278_v21  ;;  %v541_v22 = vmul.f32 %v2998_v0, %v278_v21  ;;  %v3000_v23 = vstv %s2982_s11 }
 0x139   : > { %v634_v20 = vmul.f32 %v3000_v23, %v278_v21  ;;  %v3002_v18 = vstv %s2984_s24  ;;  %v3004_v47 = vstv %s2986_s14  ;;  %v3006_v43 = vstv %s2988_s5 }
 0x13a   : > { %v718_v31 = vmul.f32 %v3002_v18, %v278_v21  ;;  %v811_v36 = vmul.f32 %v3004_v47, %v278_v21  ;;  %v904_v7 = vmul.f32 %v3006_v43, %v278_v21  ;;  %v440_v46 = vadd.f32 %v438_v29, %v435_v54 }
 0x13b   : > { %v360_v61 = vadd.f32 %v358_v19, %v355_v56  ;;  %v2347_v44 = vadd.f32 %v347_v39, %v2251_v60  ;;  %v533_v14 = vadd.f32 %v531_v63, %v528_v59  ;;  %v626_v30 = vadd.f32 %v624_v58, %v621_v5 }
 0x13c   : > { %v710_v1 = vadd.f32 %v708_v57, %v705_v34  ;;  %v803_v25 = vadd.f32 %v801_v62, %v798_v27  ;;  %v896_v8 = vadd.f32 %v894_v3, %v891_v9  ;;  %v3009_v33 = vstv %s2999_s1  ;;  %v273_v3 = vpop.permute.xlu0 %272 }
 0x13d   : > { %v2349_v6 = vadd.f32 %v360_v61, %v350_v11  ;;  %v451_v50 = vmul.f32 %v3009_v33, %v280_v51  ;;  %v3010_v45 = vstv %s3001_s9  ;;  %v3011_v28 = vstv %s3003_s26 }
 0x13e   : > { %v544_v16 = vmul.f32 %v3010_v45, %v280_v51  ;;  %v637_v21 = vmul.f32 %v3011_v28, %v280_v51  ;;  %v3012_v54 = vstv %s3005_s28  ;;  %v3013_v29 = vstv %s3007_s7 }
 0x13f   : > { %v721_v56 = vmul.f32 %v3012_v54, %v280_v51  ;;  %v814_v17 = vmul.f32 %v3013_v29, %v280_v51  ;;  %v442_v60 = vadd.f32 %v440_v46, %v430_v38  ;;  %v453_v52 = vadd.f32 %v451_v50, %v448_v37 }
 0x140   : > { %v3014_v59 = vstv %s3008_s8  ;;  %v277_v34 = vsel %vm276_vm5, %v269_v48, 0.0  ;;  %v546_v11 = vadd.f32 %v544_v16, %v541_v22  ;;  %v639_v27 = vadd.f32 %v637_v21, %v634_v20 }
 0x141   : > { %v907_v5 = vmul.f32 %v3014_v59, %v280_v51  ;;  %v723_v9 = vadd.f32 %v721_v56, %v718_v31  ;;  %v816_v63 = vadd.f32 %v814_v17, %v811_v36  ;;  %v535_v58 = vadd.f32 %v533_v14, %v2267_v4 }
 0x142   : > { %v2367_v57 = vadd.f32 %v626_v30, %v2271_v24  ;;  %v2369_v39 = vadd.f32 %v453_v52, %v443_v2  ;;  %v712_v35 = vadd.f32 %v710_v1, %v2273_v41  ;;  %v805_v51 = vadd.f32 %v803_v25, %v2275_v26  ;;  %v3017_v26 = vld [vmem:[#allocation78_spill] sm:$0xff] }
 0x143   : > { %v909_v38 = vadd.f32 %v907_v5, %v904_v7  ;;  %v898_v62 = vadd.f32 %v896_v8, %v2277_v55  ;;  %v364_v32 = vrot.slane %v2349_v6, 5  ;;  %v2376_v4 = vadd.f32 %v546_v11, %v2282_v42 }
 0x144   : > { %v2379_v24 = vadd.f32 %v639_v27, %v2285_v49  ;;  %v3015_v2 = vstv %s2817_s19  ;;  %v3016_v19 = vmov %v2997_v13  ;;  %vm365_vm6 = vcmp.lt.s32.totalorder %v3017_v26, 3  ;;  %s3031_s19 = sld [smem:[#allocation20_spill]] }
 0x145   : > { %v354_v10 = vmul.f32 %v3015_v2, %v277_v34  ;;  %v447_v41 = vmul.f32 %v3016_v19, %v277_v34  ;;  %vm458_vm7 = vcmp.lt.s32.totalorder %v3017_v26, 2  ;;  %v457_v55 = vrot.slane %v2369_v39, 6 }
 0x146   : > { %v725_v42 = vadd.f32 %v723_v9, %v2288_v12  ;;  %v2390_v13 = vadd.f32 %v816_v63, %v2291_v40  ;;  %v2393_v49 = vadd.f32 %v909_v38, %v2304_v53  ;;  %vm368_vm8 = vcmp.ge.s32.totalorder %v3017_v26, 3 }
 0x147   : > { %vm461_vm9 = vcmp.ge.s32.totalorder %v3017_v26, 2  ;;  %vm551_vm10 = vcmp.lt.s32.totalorder %v3017_v26, 1  ;;  %v3018_v37 = vmov %v2998_v0  ;;  %v3019_v22 = vmov %v3000_v23 }
 0x148   : > { %v540_v0 = vmul.f32 %v3018_v37, %v277_v34  ;;  %v633_v12 = vmul.f32 %v3019_v22, %v277_v34  ;;  %v3020_v23 = vmov %v3002_v18  ;;  %v279_v20 = vsel %vm276_vm5, %v273_v3, 0.0 }
 0x149   : > { %v717_v40 = vmul.f32 %v3020_v23, %v277_v34  ;;  %vm728_vm11 = vcmp.lt.s32.totalorder %v3017_v26, 7  ;;  %v3021_v53 = vmov %v3004_v47  ;;  %v3022_v31 = vstv %s2977_s4 }
 0x14a   : > { %v810_v18 = vmul.f32 %v3021_v53, %v277_v34  ;;  %v357_v47 = vmul.f32 %v3022_v31, %v279_v20  ;;  %v3023_v36 = vmov %v3009_v33  ;;  %v3024_v7 = vmov %v3010_v45  ;;  %s1046_s29 = sshll.u32 %s3031_s19, 4  ;;  %s938_s6 = scalar_lea.sflag [#allocation4], %s3031_s19 }
 0x14b   : > { %v450_v43 = vmul.f32 %v3023_v36, %v279_v20  ;;  %v543_v46 = vmul.f32 %v3024_v7, %v279_v20  ;;  %vm554_vm12 = vcmp.ge.s32.totalorder %v3017_v26, 1  ;;  %vm821_vm13 = vcmp.lt.s32.totalorder %v3017_v26, 6  ;;  %s175_s16 = scalar_lea.vmem [#allocation7], %s1046_s29 }
 0x14c   : > { %v3025_v61 = vstv %s2988_s5  ;;  %v3026_v30 = vmov %v3012_v54  ;;  %v3027_v1 = vmov %v3013_v29  ;;  %v3028_v25 = vmov %v3014_v59  ;;  %v3030_v54 = vld [vmem:[#allocation100_spill] sm:$0xff]  ;;  %s951_s2 = sshll.u32 %s175_s16, 4  ;;  %s2476_s2 = int_to_ptr.vmem [resolvable:$true] %s951_s2 }
 0x14d   : > { %v903_v14 = vmul.f32 %v3025_v61, %v277_v34  ;;  %v720_v15 = vmul.f32 %v3026_v30, %v279_v20  ;;  %v813_v48 = vmul.f32 %v3027_v1, %v279_v20  ;;  %v906_v8 = vmul.f32 %v3028_v25, %v279_v20  ;;  %s1273_s20 = scalar_lea.vmem %s2476_s2, 256  ;;  %p1280_p10 = scmp.lt.s32.totalorder %s2476_s2, %s1278_s12 }
 0x14e   : > { %vm914_vm14 = vcmp.lt.s32.totalorder %v3017_v26, 5  ;;  %v550_v6 = vrot.slane %v2376_v4, 7  ;;  %v359_v33 = vadd.f32 %v357_v47, %v354_v10  ;;  %v452_v50 = vadd.f32 %v450_v43, %v447_v41  ;;  %p1274_p13 = scmp.ne.s32.totalorder %s2476_s2, %s1273_s20  ;;  %p1281_p1 = scmp.lt.s32.totalorder %s1279_s15, %s1273_s20 }
 0x14f   : > { %v545_v45 = vadd.f32 %v543_v46, %v540_v0  ;;  %v3029_v16 = vmov %v3011_v28  ;;  %v722_v21 = vadd.f32 %v720_v15, %v717_v40  ;;  %vm732_vm15 = vcmp.le.s32.totalorder %v3030_v54, 14 }
 0x150   : > { %v636_v28 = vmul.f32 %v3029_v16, %v279_v20  ;;  %v815_v56 = vadd.f32 %v813_v48, %v810_v18  ;;  %v908_v29 = vadd.f32 %v906_v8, %v903_v14  ;;  %v727_v17 = vrot.slane %v725_v42, 1  ;;  %p1275_p8 = pnand %p1274_p13, %p3035_p12  ;;  %p1282_p4 = por %p1281_p1, %p1280_p10 }
 0x151   : > { %v361_v52 = vadd.f32 %v359_v33, %v2347_v44  ;;  %v454_v59 = vadd.f32 %v452_v50, %v442_v60  ;;  %v547_v5 = vadd.f32 %v545_v45, %v535_v58  ;;  %v820_v34 = vrot.slane %v2390_v13, 2 }
 0x152   : > { %v724_v11 = vadd.f32 %v722_v21, %v712_v35  ;;  %v817_v27 = vadd.f32 %v815_v56, %v805_v51  ;;  %v910_v9 = vadd.f32 %v908_v29, %v898_v62  ;;  %v913_v63 = vrot.slane %v2393_v49, 3  ;;  %p1276_p9 = pneg %p1275_p8 }
 0x153   : > { %v363_v39 = vrot.slane %v361_v52, 5  ;;  %v456_v38 = vrot.slane %v454_v59, 6  ;;  %v549_v3 = vrot.slane %v547_v5, 7  ;;  %v638_v4 = vadd.f32 %v636_v28, %v633_v12 }
 0x154   : > { %v726_v2 = vrot.slane %v724_v11, 1  ;;  %v819_v10 = vrot.slane %v817_v27, 2  ;;  %v912_v19 = vrot.slane %v910_v9, 3  ;;  %vm825_vm0 = vcmp.le.s32.totalorder %v3030_v54, 13  ;;  %p1283_p11 = pnand %p1282_p4, %p1276_p9 }
 0x155   : > { %v366_v41 = vsel %vm365_vm6, %v363_v39, %v364_v32  ;;  %v367_v44 = vsel %vm365_vm6, %v364_v32, %v363_v39  ;;  %v459_v60 = vsel %vm458_vm7, %v456_v38, %v457_v55  ;;  %v460_v58 = vsel %vm458_vm7, %v457_v55, %v456_v38 }
 0x156   : > { %v370_v35 = vsel %vm368_vm8, %v367_v44, 0.0  ;;  %v463_v51 = vsel %vm461_vm9, %v460_v58, 0.0  ;;  %v466_v62 = vadd.f32 %v459_v60, %v366_v41  ;;  %v552_v42 = vsel %vm551_vm10, %v549_v3, %v550_v6 }
 0x157   : > { %v465_v13 = vadd.f32 %v463_v51, %v370_v35  ;;  %v553_v32 = vsel %vm551_vm10, %v550_v6, %v549_v3  ;;  %v729_v49 = vsel %vm728_vm11, %v726_v2, %v727_v17  ;;  %v730_v55 = vsel %vm728_vm11, %v727_v17, %v726_v2 }
 0x158   : > { %v556_v37 = vsel %vm554_vm12, %v553_v32, 0.0  ;;  %v559_v0 = vadd.f32 %v552_v42, %v466_v62  ;;  %v640_v22 = vadd.f32 %v638_v4, %v2367_v57  ;;  %v822_v12 = vsel %vm821_vm13, %v819_v10, %v820_v34 }
 0x159   : > { %v558_v23 = vadd.f32 %v556_v37, %v465_v13  ;;  %v823_v40 = vsel %vm821_vm13, %v820_v34, %v819_v10  ;;  %v915_v20 = vsel %vm914_vm14, %v912_v19, %v913_v63  ;;  %v916_v53 = vsel %vm914_vm14, %v913_v63, %v912_v19 }
 0x15a   : > { %v643_v18 = vadd.f32 %v2379_v24, %v559_v0  ;;  %v734_v57 = vsel %vm732_vm15, %v730_v55, 0.0  ;;  %vm918_vm1 = vcmp.le.s32.totalorder %v3030_v54, 12  ;;  %v827_v43 = vsel %vm825_vm0, %v823_v40, 0.0 }
 0x15b   : > { %v642_v31 = vadd.f32 %v640_v22, %v558_v23  ;;  %v920_v61 = vsel %vm918_vm1, %v916_v53, 0.0 }
 0x15c   : > { %v736_v47 = vadd.f32 %v734_v57, %v643_v18 }
 0x15d   : > { %v735_v36 = vadd.f32 %v729_v49, %v642_v31 }
 0x15e   : > { %v829_v7 = vadd.f32 %v827_v43, %v736_v47 }
 0x15f   : > { %v828_v46 = vadd.f32 %v822_v12, %v735_v36 }
 0x160   : > { %v922_v26 = vadd.f32 %v920_v61, %v829_v7 }
 0x161   : > { %v921_v14 = vadd.f32 %v915_v20, %v828_v46 }
 0x162   : > { %v1145_v30 = vmul.f32 -1.442695, %v922_v26 }
 0x163   : > { %v1144_v24 = vmul.f32 -1.442695, %v921_v14 }
 0x164   : > { %1220 = vpow2.f32 %v1145_v30 }
 0x165   : > { %1222 = vpow2.f32 %v1144_v24 }
 0x16e   : > { %v1221_v15 = vpop.eup %1220 }
 0x16f   : > { %v1223_v1 = vpop.eup %1222  ;;  %v930_v48 = vadd.f32 1.0, %v1221_v15 }
 0x170   : > { %v929_v25 = vadd.f32 1.0, %v1223_v1 }
 0x171   : > { %1224 = vrcp.f32 %v930_v48 }
 0x172   : > { %1226 = vrcp.f32 %v929_v25 }
 0x17b   : > { %v1225_v8 = vpop.eup %1224 }
 0x17c   : > { %v1227_v6 = vpop.eup %1226  ;;  %936 = vst [vmem:[%s175_s16 + $0x8] sm:$0xff] %v1225_v8 }
 0x17d   : > { %935 = vst [vmem:[%s175_s16] sm:$0xff] %v1227_v6 }
 0x17e   : > { %1286 = shalt.err (!%p1283_p11)
}
 0x17f   : > { %s1287_s18 = scalar_lea.hbm %s2474_s3, 256  ;;  %s1291_s30 = scalar_lea.hbm %s3034_s27, 512 }
 0x180   : > { %p1288_p0 = scmp.ne.s32.totalorder %s2474_s3, %s1287_s18  ;;  %p1292_p6 = scmp.lt.u32.totalorder %s2474_s3, %s3034_s27 }
 0x181   : > { %p1293_p5 = scmp.lt.u32.totalorder %s1291_s30, %s1287_s18  ;;  %p1295_p13 = scmp.lt.u32.totalorder %s1287_s18, %s2474_s3 }
 0x182   : > { %p1289_p2 = pnand %p1288_p0, %p3035_p12 }
 0x183   : > { %p1294_p3 = por %p1293_p5, %p1292_p6 }
 0x184   : > { %p1290_p7 = pneg %p1289_p2 }
 0x185   : > { %p1296_p8 = por %p1295_p13, %p1294_p3 }
 0x187   : > { %p1297_p9 = pnand %p1296_p8, %p1290_p7 }
 0x189   : > { %1300 = shalt.err (!%p1297_p9)
}
 0x18a   : > { %s1356_s24 = smov 128   ;;  %s1357_s14 = smov 8  }
 0x18b   : > { %1159 = dma.vmem_to_hbm [thread:$0]  (%p3035_p12), %s2476_s2, 256, %s2474_s3, %s938_s6, %s1356_s24, %s1356_s24, %s1357_s14  }
 0x18c PF: > { %s3036_s5 = sld [smem:[#allocation11_spill]]  ;;  %s3037_s1 = sld [smem:[#allocation19_spill]] }
 0x18d   : > { %s3038_s9 = sld [smem:[#allocation14_spill]] }
 0x192   : > { %s966_s26 = sand.u32 1, %s3036_s5   ;;  %p3039_p10 = scmp.ne.s32.totalorder %s3037_s1, 0 }
 0x193   : > { %p3040_p1 = scmp.ge.s32.totalorder %s3038_s9, 2  ;;  %s967_s28 = scalar_lea.sflag [#allocation4], %s966_s26 }
 0x195   : > { %p1170_p4 = pnand %p3040_p1, %p3039_p10 }
 0x197   : > { %1326 = dma.done.wait (!%p1170_p4), %s967_s28, 256  }
 0x198   : > { %1328 = vsyncadd (!%p1170_p4), %s967_s28, 4294967040  ;;  %s3041_s12 = sld [smem:[#allocation16_spill]]  ;;  %s3042_s9 = sld [smem:[#allocation12_spill]] }
 0x199   : > { %s3043_s10 = sld [smem:[#allocation13_spill]]  ;;  %s3044_s11 = sld [smem:[#allocation17_spill]] }
 0x19e   : > { %p16_p11 = scmp.ge.s32.totalorder %s3041_s12, 4  }
 0x1a0   :  { %18 = sbr.rel (!%p16_p11) target bundleno = 10 (0xa), region = 78 }
 0x1a7   :  { %972 = vsyncpa [#allocation3], 1 }
 0x1a8   :  { %974 = vsyncpa [#allocation3 + $0x1], 1 }
 0x1a9   :  { %975 = vsyncpa [#allocation4], 1 }
 0x1aa   :  { %977 = vsyncpa [#allocation4 + $0x1], 1 }
 0x1ab   :  { %978 = vsyncpa [#allocation5], 1 }
 0x1ac   :  { %980 = vsyncpa [#allocation5 + $0x1], 1 }

</bundles_post_ra>
